<compile_context>
chip_gen: v7x
topology: tpu7x:2x2x1
jax: 0.10.0
libtpu: 0.0.40
codegen_flags: <defaults>
</compile_context>

<pallas_src>
import functools

import jax
import jax.numpy as jnp
from jax import lax
from jax.experimental import pallas as pl
from jax.experimental.pallas import tpu as pltpu

EPS = 1e-5


# ---------------- in-kernel helpers ----------------

def _conv3x3_rows(x, a_ref, H):
    """3x3 'same' conv in rows layout.

    x:     (R, W*Cin)  with R = N*H image rows; lanes hold (w, cin).
    a_ref: (3, W*Cin, W*Cout) banded weight matrices, one per vertical tap
           (horizontal taps + their zero padding are folded into the band).
    Returns (R, W*Cout) fp32.
    """
    R = x.shape[0]
    h_idx = lax.broadcasted_iota(jnp.int32, x.shape, 0) % H
    # row above / below, zeroed at image top / bottom (masks also kill the
    # cross-image wrap of the rotation).
    up = jnp.where(h_idx > 0, pltpu.roll(x, 1, axis=0), 0.0)
    dn = jnp.where(h_idx < H - 1, pltpu.roll(x, R - 1, axis=0), 0.0)
    out = jnp.dot(up, a_ref[0], preferred_element_type=jnp.float32)
    out = out + jnp.dot(x, a_ref[1], preferred_element_type=jnp.float32)
    out = out + jnp.dot(dn, a_ref[2], preferred_element_type=jnp.float32)
    return out


def _bn_scale_shift(h, g_ref, b_ref, gsum_ref, inv_m):
    """Training-mode BN folded into a per-lane (scale, shift), one-pass stats.

    h: (R, W*C). gsum_ref: (W*C, W*C) with gsum[i,j] = (i%C == j%C), used to
    reduce per-lane sums to per-channel sums AND broadcast them back to lanes
    in a single MXU pass.
    """
    col_sum = jnp.sum(h, axis=0, keepdims=True)          # (1, W*C)
    col_sq = jnp.sum(h * h, axis=0, keepdims=True)       # (1, W*C)
    mean = jnp.dot(col_sum, gsum_ref[...], preferred_element_type=jnp.float32) * inv_m
    ex2 = jnp.dot(col_sq, gsum_ref[...], preferred_element_type=jnp.float32) * inv_m
    var = ex2 - mean * mean                               # biased variance (fp32)
    scale = g_ref[...] * lax.rsqrt(var + EPS)
    shift = b_ref[...] - mean * scale
    return scale, shift


# ---------------- the fused kernel ----------------

def _residual_block_kernel(H, inv_m,
                           x_ref, a1_ref, a2_ref, s_ref, gsum_ref,
                           g1_ref, b1_ref, g2_ref, b2_ref, gs_ref, bs_ref,
                           out_ref):
    x = x_ref[...]                                         # (R, W*Cin)

    # conv1 -> bn1 -> relu   (conv bias omitted: cancels under training-mode BN)
    c1 = _conv3x3_rows(x, a1_ref, H)
    s1, t1 = _bn_scale_shift(c1, g1_ref, b1_ref, gsum_ref, inv_m)
    h1 = jnp.maximum(c1 * s1 + t1, 0.0)                    # (R, W*Cout)

    # conv2 -> bn2 (stats only; application fused with residual add below)
    c2 = _conv3x3_rows(h1, a2_ref, H)
    s2, t2 = _bn_scale_shift(c2, g2_ref, b2_ref, gsum_ref, inv_m)

    # shortcut: 1x1 conv as a block-diagonal matmul on the rows layout -> bn
    sc = jnp.dot(x, s_ref[...], preferred_element_type=jnp.float32)
    ss, ts = _bn_scale_shift(sc, gs_ref, bs_ref, gsum_ref, inv_m)

    # bn2 + bn_shortcut + residual add + relu in one VPU pass, lane-dense store
    out_ref[...] = jnp.maximum((c2 * s2 + t2) + (sc * ss + ts), 0.0)


# ---------------- wrapper-side weight preprocessing ----------------

def _band_conv_weights(w_hwio, W):
    """(3,3,Ci,Co) HWIO kernel -> (3, W*Ci, W*Co) banded matrices (one per dy).

    A[dy, w_in*Ci + ci, w_out*Co + co] = w[dy, w_in - w_out + 1, ci, co]
    when |w_in - w_out| <= 1, else 0 (which also encodes the SAME padding
    along W).
    """
    w_hwio = w_hwio.astype(jnp.float32)
    Ci, Co = w_hwio.shape[2], w_hwio.shape[3]
    win = jnp.arange(W)[:, None]
    wout = jnp.arange(W)[None, :]
    a = jnp.zeros((3, W, Ci, W, Co), jnp.float32)
    for dx in range(3):
        m = (win == wout + dx - 1).astype(jnp.float32)          # (W_in, W_out)
        a = a + m[None, :, None, :, None] * w_hwio[:, dx][:, None, :, None, :]
    return a.reshape(3, W * Ci, W * Co)


def _block_diag_1x1(ws, W):
    """(Ci, Co) 1x1 conv -> (W*Ci, W*Co) block-diagonal matrix."""
    ws = ws.astype(jnp.float32)
    Ci, Co = ws.shape
    eye = jnp.eye(W, dtype=jnp.float32)
    return (eye[:, None, :, None] * ws[None, :, None, :]).reshape(W * Ci, W * Co)


# ---------------- wrapper ----------------

def residual_block(x_nchw, params):
    N, Ci, H, W = x_nchw.shape
    Co = params["w1"].shape[-1]
    R, WCi, WCo = N * H, W * Ci, W * Co

    # NCHW (PyTorch) -> NHWC -> rows layout (N*H, W*Ci): channels on lanes.
    x_rows = jnp.transpose(x_nchw, (0, 2, 3, 1)).astype(jnp.float32).reshape(R, WCi)

    # Fold the 3x3 horizontal taps (and the 1x1 shortcut) into banded weight
    # matrices so each conv is 3 lane-dense MXU matmuls with K = W*C.
    a1 = _band_conv_weights(params["w1"], W)                 # (3, W*Ci, W*Co)
    a2 = _band_conv_weights(params["w2"], W)                 # (3, W*Co, W*Co)
    s = _block_diag_1x1(params["ws"], W)                     # (W*Ci, W*Co)

    # Per-channel reduce-and-broadcast matrix for BN stats in the rows layout.
    ch = jnp.arange(WCo) % Co
    gsum = (ch[:, None] == ch[None, :]).astype(jnp.float32)  # (W*Co, W*Co)

    # gamma/beta pre-tiled to the (w, co) lane order.
    def tile(v):
        return jnp.tile(v.reshape(-1).astype(jnp.float32), W).reshape(1, WCo)

    g1, b1 = tile(params["g1"]), tile(params["be1"])
    g2, b2 = tile(params["g2"]), tile(params["be2"])
    gs, bs = tile(params["gs"]), tile(params["bes"])

    inv_m = 1.0 / float(N * H * W)
    kernel = functools.partial(_residual_block_kernel, H, inv_m)

    vmem = pl.BlockSpec(memory_space=pltpu.MemorySpace.VMEM)
    args = (x_rows, a1, a2, s, gsum, g1, b1, g2, b2, gs, bs)
    out_rows = pl.pallas_call(
        kernel,
        out_shape=jax.ShapeDtypeStruct((R, WCo), jnp.float32),
        in_specs=[vmem] * len(args),
        out_specs=vmem,
    )(*args)

    # rows layout -> NHWC -> NCHW
    return jnp.transpose(out_rows.reshape(N, H, W, Co), (0, 3, 1, 2))


# ---------------- pure-JAX reference (PyTorch semantics, incl. conv biases) ----------------

def ref_residual_block(x_nchw, p):
    x = jnp.transpose(x_nchw, (0, 2, 3, 1)).astype(jnp.float32)
    dn = ("NHWC", "HWIO", "NHWC")

    def bn(h, g, b):
        mean = jnp.mean(h, axis=(0, 1, 2), keepdims=True)
        var = jnp.mean((h - mean) ** 2, axis=(0, 1, 2), keepdims=True)
        return (h - mean) * lax.rsqrt(var + EPS) * g.reshape(1, 1, 1, -1) \
               + b.reshape(1, 1, 1, -1)

    h = lax.conv_general_dilated(x, p["w1"], (1, 1), "SAME",
                                 dimension_numbers=dn) + p["b1"].reshape(1, 1, 1, -1)
    h = jnp.maximum(bn(h, p["g1"], p["be1"]), 0.0)
    h = lax.conv_general_dilated(h, p["w2"], (1, 1), "SAME",
                                 dimension_numbers=dn) + p["b2"].reshape(1, 1, 1, -1)
    h = bn(h, p["g2"], p["be2"])
    sc = jnp.einsum("nhwc,co->nhwo", x, p["ws"]) + p["bs"].reshape(1, 1, 1, -1)
    sc = bn(sc, p["gs"], p["bes"])
    out = jnp.maximum(h + sc, 0.0)
    return jnp.transpose(out, (0, 3, 1, 2))


# ---------------- main ----------------

if __name__ == "__main__":
    N, Cin, Cout, H, W = 2, 4, 8, 16, 16   # in_c != out_c exercises the conv shortcut

    key = jax.random.PRNGKey(0)
    keys = jax.random.split(key, 12)

    params = {
        # conv weights in HWIO (3,3,Ci,Co); 1x1 shortcut as (Ci,Co)
        "w1": 0.1 * jax.random.normal(keys[0], (3, 3, Cin, Cout), jnp.float32),
        "b1": 0.1 * jax.random.normal(keys[1], (Cout,), jnp.float32),
        "g1": 1.0 + 0.1 * jax.random.normal(keys[2], (Cout,), jnp.float32),
        "be1": 0.1 * jax.random.normal(keys[3], (Cout,), jnp.float32),
        "w2": 0.1 * jax.random.normal(keys[4], (3, 3, Cout, Cout), jnp.float32),
        "b2": 0.1 * jax.random.normal(keys[5], (Cout,), jnp.float32),
        "g2": 1.0 + 0.1 * jax.random.normal(keys[6], (Cout,), jnp.float32),
        "be2": 0.1 * jax.random.normal(keys[7], (Cout,), jnp.float32),
        "ws": 0.1 * jax.random.normal(keys[8], (Cin, Cout), jnp.float32),
        "bs": 0.1 * jax.random.normal(keys[9], (Cout,), jnp.float32),
        "gs": 1.0 + 0.1 * jax.random.normal(keys[10], (Cout,), jnp.float32),
        "bes": 0.1 * jax.random.normal(keys[11], (Cout,), jnp.float32),
    }

    x = jax.random.normal(jax.random.PRNGKey(1), (N, Cin, H, W), jnp.float32)

    out = jax.block_until_ready(residual_block(x, params))
    ref = jax.block_until_ready(ref_residual_block(x, params))

    assert out.shape == (N, Cout, H, W), out.shape
    max_err = float(jnp.max(jnp.abs(out - ref)))
    assert jnp.allclose(out, ref, atol=2e-3, rtol=2e-3), max_err

    print("KERNEL_OK")
</pallas_src>

<mosaic_0001>
module attributes {stable_mosaic.version = 11 : i64} {
  func.func @_residual_block_kernel(%arg0: memref<32x64xf32, #tpu.memory_space<vmem>>, %arg1: memref<3x64x128xf32, #tpu.memory_space<vmem>>, %arg2: memref<3x128x128xf32, #tpu.memory_space<vmem>>, %arg3: memref<64x128xf32, #tpu.memory_space<vmem>>, %arg4: memref<128x128xf32, #tpu.memory_space<vmem>>, %arg5: memref<1x128xf32, #tpu.memory_space<vmem>>, %arg6: memref<1x128xf32, #tpu.memory_space<vmem>>, %arg7: memref<1x128xf32, #tpu.memory_space<vmem>>, %arg8: memref<1x128xf32, #tpu.memory_space<vmem>>, %arg9: memref<1x128xf32, #tpu.memory_space<vmem>>, %arg10: memref<1x128xf32, #tpu.memory_space<vmem>>, %arg11: memref<32x128xf32, #tpu.memory_space<vmem>>) attributes {dimension_semantics = [], scalar_prefetch = 0 : i64, scratch_operands = 0 : i64, tpu.core_type = #tpu.core_type<tc>} {
    %c0 = arith.constant 0 : index
    %c0_0 = arith.constant 0 : index
    %0 = vector.load %arg0[%c0, %c0_0] : memref<32x64xf32, #tpu.memory_space<vmem>>, vector<32x64xf32>
    %1 = tpu.iota {dimensions = array<i32: 0>} : vector<32x64xi32>
    %c16_i32 = arith.constant 16 : i32
    %c0_i32 = arith.constant 0 : i32
    %2 = arith.cmpi eq, %c16_i32, %c0_i32 : i32
    %c1_i32 = arith.constant 1 : i32
    %3 = arith.select %2, %c1_i32, %c16_i32 : i32
    %4 = vector.broadcast %3 : i32 to vector<32x64xi32>
    %5 = arith.remsi %1, %4 : vector<32x64xi32>
    %c0_i32_1 = arith.constant 0 : i32
    %6 = vector.broadcast %c0_i32_1 : i32 to vector<32x64xi32>
    %7 = arith.cmpi ne, %5, %6 : vector<32x64xi32>
    %c0_i32_2 = arith.constant 0 : i32
    %8 = vector.broadcast %c0_i32_2 : i32 to vector<32x64xi32>
    %9 = arith.cmpi slt, %5, %8 : vector<32x64xi32>
    %c0_i32_3 = arith.constant 0 : i32
    %10 = arith.cmpi slt, %3, %c0_i32_3 : i32
    %11 = vector.broadcast %10 : i1 to vector<32x64xi1>
    %12 = vector.broadcast %11 : vector<32x64xi1> to vector<32x64xi1>
    %13 = arith.xori %9, %12 : vector<32x64xi1>
    %14 = arith.andi %13, %7 : vector<32x64xi1>
    %15 = vector.broadcast %3 : i32 to vector<32x64xi32>
    %16 = arith.addi %5, %15 : vector<32x64xi32>
    %17 = arith.select %14, %16, %5 : vector<32x64xi1>, vector<32x64xi32>
    %c0_i32_4 = arith.constant 0 : i32
    %18 = vector.broadcast %c0_i32_4 : i32 to vector<32x64xi32>
    %19 = arith.cmpi sgt, %17, %18 : vector<32x64xi32>
    %c1_i32_5 = arith.constant 1 : i32
    %20 = tpu.dynamic_rotate %0 by %c1_i32_5 dim 0 : vector<32x64xf32>, i32 -> vector<32x64xf32>
    %cst = arith.constant 0.000000e+00 : f32
    %21 = vector.broadcast %cst : f32 to vector<32x64xf32>
    %22 = arith.select %19, %20, %21 : vector<32x64xi1>, vector<32x64xf32>
    %c15_i32 = arith.constant 15 : i32
    %23 = vector.broadcast %c15_i32 : i32 to vector<32x64xi32>
    %24 = arith.cmpi slt, %17, %23 : vector<32x64xi32>
    %c31_i32 = arith.constant 31 : i32
    %25 = tpu.dynamic_rotate %0 by %c31_i32 dim 0 : vector<32x64xf32>, i32 -> vector<32x64xf32>
    %cst_6 = arith.constant 0.000000e+00 : f32
    %26 = vector.broadcast %cst_6 : f32 to vector<32x64xf32>
    %27 = arith.select %24, %25, %26 : vector<32x64xi1>, vector<32x64xf32>
    %c0_7 = arith.constant 0 : index
    %c0_8 = arith.constant 0 : index
    %c0_9 = arith.constant 0 : index
    %28 = vector.load %arg1[%c0_7, %c0_8, %c0_9] : memref<3x64x128xf32, #tpu.memory_space<vmem>>, vector<1x64x128xf32>
    %29 = vector.shape_cast %28 : vector<1x64x128xf32> to vector<64x128xf32>
    %cst_10 = arith.constant dense<0.000000e+00> : vector<32x128xf32>
    %30 = tpu.matmul %22, %29, %cst_10 {dimension_numbers = #tpu.dot_dimension_numbers<[1], [0], [0], [1], [0, 0, 1, 1], [], []>} : vector<32x64xf32>, vector<64x128xf32>, vector<32x128xf32> -> vector<32x128xf32>
    %c1 = arith.constant 1 : index
    %c0_11 = arith.constant 0 : index
    %c0_12 = arith.constant 0 : index
    %31 = vector.load %arg1[%c1, %c0_11, %c0_12] : memref<3x64x128xf32, #tpu.memory_space<vmem>>, vector<1x64x128xf32>
    %32 = vector.shape_cast %31 : vector<1x64x128xf32> to vector<64x128xf32>
    %cst_13 = arith.constant dense<0.000000e+00> : vector<32x128xf32>
    %33 = tpu.matmul %0, %32, %cst_13 {dimension_numbers = #tpu.dot_dimension_numbers<[1], [0], [0], [1], [0, 0, 1, 1], [], []>} : vector<32x64xf32>, vector<64x128xf32>, vector<32x128xf32> -> vector<32x128xf32>
    %34 = arith.addf %30, %33 : vector<32x128xf32>
    %c2 = arith.constant 2 : index
    %c0_14 = arith.constant 0 : index
    %c0_15 = arith.constant 0 : index
    %35 = vector.load %arg1[%c2, %c0_14, %c0_15] : memref<3x64x128xf32, #tpu.memory_space<vmem>>, vector<1x64x128xf32>
    %36 = vector.shape_cast %35 : vector<1x64x128xf32> to vector<64x128xf32>
    %cst_16 = arith.constant dense<0.000000e+00> : vector<32x128xf32>
    %37 = tpu.matmul %27, %36, %cst_16 {dimension_numbers = #tpu.dot_dimension_numbers<[1], [0], [0], [1], [0, 0, 1, 1], [], []>} : vector<32x64xf32>, vector<64x128xf32>, vector<32x128xf32> -> vector<32x128xf32>
    %38 = arith.addf %34, %37 : vector<32x128xf32>
    %cst_17 = arith.constant dense<0.000000e+00> : vector<128xf32>
    %39 = vector.multi_reduction <add>, %38, %cst_17 [0] : vector<32x128xf32> to vector<128xf32>
    %40 = vector.shape_cast %39 : vector<128xf32> to vector<1x128xf32>
    %41 = arith.mulf %38, %38 : vector<32x128xf32>
    %cst_18 = arith.constant dense<0.000000e+00> : vector<128xf32>
    %42 = vector.multi_reduction <add>, %41, %cst_18 [0] : vector<32x128xf32> to vector<128xf32>
    %43 = vector.shape_cast %42 : vector<128xf32> to vector<1x128xf32>
    %c0_19 = arith.constant 0 : index
    %c0_20 = arith.constant 0 : index
    %44 = vector.load %arg4[%c0_19, %c0_20] : memref<128x128xf32, #tpu.memory_space<vmem>>, vector<128x128xf32>
    %cst_21 = arith.constant dense<0.000000e+00> : vector<1x128xf32>
    %45 = tpu.matmul %40, %44, %cst_21 {dimension_numbers = #tpu.dot_dimension_numbers<[1], [0], [0], [1], [0, 0, 1, 1], [], []>} : vector<1x128xf32>, vector<128x128xf32>, vector<1x128xf32> -> vector<1x128xf32>
    %cst_22 = arith.constant 0.001953125 : f32
    %46 = vector.broadcast %cst_22 : f32 to vector<1x128xf32>
    %47 = arith.mulf %45, %46 : vector<1x128xf32>
    %c0_23 = arith.constant 0 : index
    %c0_24 = arith.constant 0 : index
    %48 = vector.load %arg4[%c0_23, %c0_24] : memref<128x128xf32, #tpu.memory_space<vmem>>, vector<128x128xf32>
    %cst_25 = arith.constant dense<0.000000e+00> : vector<1x128xf32>
    %49 = tpu.matmul %43, %48, %cst_25 {dimension_numbers = #tpu.dot_dimension_numbers<[1], [0], [0], [1], [0, 0, 1, 1], [], []>} : vector<1x128xf32>, vector<128x128xf32>, vector<1x128xf32> -> vector<1x128xf32>
    %cst_26 = arith.constant 0.001953125 : f32
    %50 = vector.broadcast %cst_26 : f32 to vector<1x128xf32>
    %51 = arith.mulf %49, %50 : vector<1x128xf32>
    %52 = arith.mulf %47, %47 : vector<1x128xf32>
    %53 = arith.subf %51, %52 : vector<1x128xf32>
    %c0_27 = arith.constant 0 : index
    %c0_28 = arith.constant 0 : index
    %54 = vector.load %arg5[%c0_27, %c0_28] : memref<1x128xf32, #tpu.memory_space<vmem>>, vector<1x128xf32>
    %cst_29 = arith.constant 9.99999974E-6 : f32
    %55 = vector.broadcast %cst_29 : f32 to vector<1x128xf32>
    %56 = arith.addf %53, %55 : vector<1x128xf32>
    %57 = math.rsqrt %56 : vector<1x128xf32>
    %58 = arith.mulf %54, %57 : vector<1x128xf32>
    %c0_30 = arith.constant 0 : index
    %c0_31 = arith.constant 0 : index
    %59 = vector.load %arg6[%c0_30, %c0_31] : memref<1x128xf32, #tpu.memory_space<vmem>>, vector<1x128xf32>
    %60 = arith.mulf %47, %58 : vector<1x128xf32>
    %61 = arith.subf %59, %60 : vector<1x128xf32>
    %62 = vector.broadcast %58 : vector<1x128xf32> to vector<32x128xf32>
    %63 = arith.mulf %38, %62 : vector<32x128xf32>
    %64 = vector.broadcast %61 : vector<1x128xf32> to vector<32x128xf32>
    %65 = arith.addf %63, %64 : vector<32x128xf32>
    %cst_32 = arith.constant 0.000000e+00 : f32
    %66 = vector.broadcast %cst_32 : f32 to vector<32x128xf32>
    %67 = arith.maximumf %65, %66 : vector<32x128xf32>
    %68 = tpu.iota {dimensions = array<i32: 0>} : vector<32x128xi32>
    %c16_i32_33 = arith.constant 16 : i32
    %c0_i32_34 = arith.constant 0 : i32
    %69 = arith.cmpi eq, %c16_i32_33, %c0_i32_34 : i32
    %c1_i32_35 = arith.constant 1 : i32
    %70 = arith.select %69, %c1_i32_35, %c16_i32_33 : i32
    %71 = vector.broadcast %70 : i32 to vector<32x128xi32>
    %72 = arith.remsi %68, %71 : vector<32x128xi32>
    %c0_i32_36 = arith.constant 0 : i32
    %73 = vector.broadcast %c0_i32_36 : i32 to vector<32x128xi32>
    %74 = arith.cmpi ne, %72, %73 : vector<32x128xi32>
    %c0_i32_37 = arith.constant 0 : i32
    %75 = vector.broadcast %c0_i32_37 : i32 to vector<32x128xi32>
    %76 = arith.cmpi slt, %72, %75 : vector<32x128xi32>
    %c0_i32_38 = arith.constant 0 : i32
    %77 = arith.cmpi slt, %70, %c0_i32_38 : i32
    %78 = vector.broadcast %77 : i1 to vector<32x128xi1>
    %79 = vector.broadcast %78 : vector<32x128xi1> to vector<32x128xi1>
    %80 = arith.xori %76, %79 : vector<32x128xi1>
    %81 = arith.andi %80, %74 : vector<32x128xi1>
    %82 = vector.broadcast %70 : i32 to vector<32x128xi32>
    %83 = arith.addi %72, %82 : vector<32x128xi32>
    %84 = arith.select %81, %83, %72 : vector<32x128xi1>, vector<32x128xi32>
    %c0_i32_39 = arith.constant 0 : i32
    %85 = vector.broadcast %c0_i32_39 : i32 to vector<32x128xi32>
    %86 = arith.cmpi sgt, %84, %85 : vector<32x128xi32>
    %c1_i32_40 = arith.constant 1 : i32
    %87 = tpu.dynamic_rotate %67 by %c1_i32_40 dim 0 : vector<32x128xf32>, i32 -> vector<32x128xf32>
    %cst_41 = arith.constant 0.000000e+00 : f32
    %88 = vector.broadcast %cst_41 : f32 to vector<32x128xf32>
    %89 = arith.select %86, %87, %88 : vector<32x128xi1>, vector<32x128xf32>
    %c15_i32_42 = arith.constant 15 : i32
    %90 = vector.broadcast %c15_i32_42 : i32 to vector<32x128xi32>
    %91 = arith.cmpi slt, %84, %90 : vector<32x128xi32>
    %c31_i32_43 = arith.constant 31 : i32
    %92 = tpu.dynamic_rotate %67 by %c31_i32_43 dim 0 : vector<32x128xf32>, i32 -> vector<32x128xf32>
    %cst_44 = arith.constant 0.000000e+00 : f32
    %93 = vector.broadcast %cst_44 : f32 to vector<32x128xf32>
    %94 = arith.select %91, %92, %93 : vector<32x128xi1>, vector<32x128xf32>
    %c0_45 = arith.constant 0 : index
    %c0_46 = arith.constant 0 : index
    %c0_47 = arith.constant 0 : index
    %95 = vector.load %arg2[%c0_45, %c0_46, %c0_47] : memref<3x128x128xf32, #tpu.memory_space<vmem>>, vector<1x128x128xf32>
    %96 = vector.shape_cast %95 : vector<1x128x128xf32> to vector<128x128xf32>
    %cst_48 = arith.constant dense<0.000000e+00> : vector<32x128xf32>
    %97 = tpu.matmul %89, %96, %cst_48 {dimension_numbers = #tpu.dot_dimension_numbers<[1], [0], [0], [1], [0, 0, 1, 1], [], []>} : vector<32x128xf32>, vector<128x128xf32>, vector<32x128xf32> -> vector<32x128xf32>
    %c1_49 = arith.constant 1 : index
    %c0_50 = arith.constant 0 : index
    %c0_51 = arith.constant 0 : index
    %98 = vector.load %arg2[%c1_49, %c0_50, %c0_51] : memref<3x128x128xf32, #tpu.memory_space<vmem>>, vector<1x128x128xf32>
    %99 = vector.shape_cast %98 : vector<1x128x128xf32> to vector<128x128xf32>
    %cst_52 = arith.constant dense<0.000000e+00> : vector<32x128xf32>
    %100 = tpu.matmul %67, %99, %cst_52 {dimension_numbers = #tpu.dot_dimension_numbers<[1], [0], [0], [1], [0, 0, 1, 1], [], []>} : vector<32x128xf32>, vector<128x128xf32>, vector<32x128xf32> -> vector<32x128xf32>
    %101 = arith.addf %97, %100 : vector<32x128xf32>
    %c2_53 = arith.constant 2 : index
    %c0_54 = arith.constant 0 : index
    %c0_55 = arith.constant 0 : index
    %102 = vector.load %arg2[%c2_53, %c0_54, %c0_55] : memref<3x128x128xf32, #tpu.memory_space<vmem>>, vector<1x128x128xf32>
    %103 = vector.shape_cast %102 : vector<1x128x128xf32> to vector<128x128xf32>
    %cst_56 = arith.constant dense<0.000000e+00> : vector<32x128xf32>
    %104 = tpu.matmul %94, %103, %cst_56 {dimension_numbers = #tpu.dot_dimension_numbers<[1], [0], [0], [1], [0, 0, 1, 1], [], []>} : vector<32x128xf32>, vector<128x128xf32>, vector<32x128xf32> -> vector<32x128xf32>
    %105 = arith.addf %101, %104 : vector<32x128xf32>
    %cst_57 = arith.constant dense<0.000000e+00> : vector<128xf32>
    %106 = vector.multi_reduction <add>, %105, %cst_57 [0] : vector<32x128xf32> to vector<128xf32>
    %107 = vector.shape_cast %106 : vector<128xf32> to vector<1x128xf32>
    %108 = arith.mulf %105, %105 : vector<32x128xf32>
    %cst_58 = arith.constant dense<0.000000e+00> : vector<128xf32>
    %109 = vector.multi_reduction <add>, %108, %cst_58 [0] : vector<32x128xf32> to vector<128xf32>
    %110 = vector.shape_cast %109 : vector<128xf32> to vector<1x128xf32>
    %c0_59 = arith.constant 0 : index
    %c0_60 = arith.constant 0 : index
    %111 = vector.load %arg4[%c0_59, %c0_60] : memref<128x128xf32, #tpu.memory_space<vmem>>, vector<128x128xf32>
    %cst_61 = arith.constant dense<0.000000e+00> : vector<1x128xf32>
    %112 = tpu.matmul %107, %111, %cst_61 {dimension_numbers = #tpu.dot_dimension_numbers<[1], [0], [0], [1], [0, 0, 1, 1], [], []>} : vector<1x128xf32>, vector<128x128xf32>, vector<1x128xf32> -> vector<1x128xf32>
    %cst_62 = arith.constant 0.001953125 : f32
    %113 = vector.broadcast %cst_62 : f32 to vector<1x128xf32>
    %114 = arith.mulf %112, %113 : vector<1x128xf32>
    %c0_63 = arith.constant 0 : index
    %c0_64 = arith.constant 0 : index
    %115 = vector.load %arg4[%c0_63, %c0_64] : memref<128x128xf32, #tpu.memory_space<vmem>>, vector<128x128xf32>
    %cst_65 = arith.constant dense<0.000000e+00> : vector<1x128xf32>
    %116 = tpu.matmul %110, %115, %cst_65 {dimension_numbers = #tpu.dot_dimension_numbers<[1], [0], [0], [1], [0, 0, 1, 1], [], []>} : vector<1x128xf32>, vector<128x128xf32>, vector<1x128xf32> -> vector<1x128xf32>
    %cst_66 = arith.constant 0.001953125 : f32
    %117 = vector.broadcast %cst_66 : f32 to vector<1x128xf32>
    %118 = arith.mulf %116, %117 : vector<1x128xf32>
    %119 = arith.mulf %114, %114 : vector<1x128xf32>
    %120 = arith.subf %118, %119 : vector<1x128xf32>
    %c0_67 = arith.constant 0 : index
    %c0_68 = arith.constant 0 : index
    %121 = vector.load %arg7[%c0_67, %c0_68] : memref<1x128xf32, #tpu.memory_space<vmem>>, vector<1x128xf32>
    %cst_69 = arith.constant 9.99999974E-6 : f32
    %122 = vector.broadcast %cst_69 : f32 to vector<1x128xf32>
    %123 = arith.addf %120, %122 : vector<1x128xf32>
    %124 = math.rsqrt %123 : vector<1x128xf32>
    %125 = arith.mulf %121, %124 : vector<1x128xf32>
    %c0_70 = arith.constant 0 : index
    %c0_71 = arith.constant 0 : index
    %126 = vector.load %arg8[%c0_70, %c0_71] : memref<1x128xf32, #tpu.memory_space<vmem>>, vector<1x128xf32>
    %127 = arith.mulf %114, %125 : vector<1x128xf32>
    %128 = arith.subf %126, %127 : vector<1x128xf32>
    %c0_72 = arith.constant 0 : index
    %c0_73 = arith.constant 0 : index
    %129 = vector.load %arg3[%c0_72, %c0_73] : memref<64x128xf32, #tpu.memory_space<vmem>>, vector<64x128xf32>
    %cst_74 = arith.constant dense<0.000000e+00> : vector<32x128xf32>
    %130 = tpu.matmul %0, %129, %cst_74 {dimension_numbers = #tpu.dot_dimension_numbers<[1], [0], [0], [1], [0, 0, 1, 1], [], []>} : vector<32x64xf32>, vector<64x128xf32>, vector<32x128xf32> -> vector<32x128xf32>
    %cst_75 = arith.constant dense<0.000000e+00> : vector<128xf32>
    %131 = vector.multi_reduction <add>, %130, %cst_75 [0] : vector<32x128xf32> to vector<128xf32>
    %132 = vector.shape_cast %131 : vector<128xf32> to vector<1x128xf32>
    %133 = arith.mulf %130, %130 : vector<32x128xf32>
    %cst_76 = arith.constant dense<0.000000e+00> : vector<128xf32>
    %134 = vector.multi_reduction <add>, %133, %cst_76 [0] : vector<32x128xf32> to vector<128xf32>
    %135 = vector.shape_cast %134 : vector<128xf32> to vector<1x128xf32>
    %c0_77 = arith.constant 0 : index
    %c0_78 = arith.constant 0 : index
    %136 = vector.load %arg4[%c0_77, %c0_78] : memref<128x128xf32, #tpu.memory_space<vmem>>, vector<128x128xf32>
    %cst_79 = arith.constant dense<0.000000e+00> : vector<1x128xf32>
    %137 = tpu.matmul %132, %136, %cst_79 {dimension_numbers = #tpu.dot_dimension_numbers<[1], [0], [0], [1], [0, 0, 1, 1], [], []>} : vector<1x128xf32>, vector<128x128xf32>, vector<1x128xf32> -> vector<1x128xf32>
    %cst_80 = arith.constant 0.001953125 : f32
    %138 = vector.broadcast %cst_80 : f32 to vector<1x128xf32>
    %139 = arith.mulf %137, %138 : vector<1x128xf32>
    %c0_81 = arith.constant 0 : index
    %c0_82 = arith.constant 0 : index
    %140 = vector.load %arg4[%c0_81, %c0_82] : memref<128x128xf32, #tpu.memory_space<vmem>>, vector<128x128xf32>
    %cst_83 = arith.constant dense<0.000000e+00> : vector<1x128xf32>
    %141 = tpu.matmul %135, %140, %cst_83 {dimension_numbers = #tpu.dot_dimension_numbers<[1], [0], [0], [1], [0, 0, 1, 1], [], []>} : vector<1x128xf32>, vector<128x128xf32>, vector<1x128xf32> -> vector<1x128xf32>
    %cst_84 = arith.constant 0.001953125 : f32
    %142 = vector.broadcast %cst_84 : f32 to vector<1x128xf32>
    %143 = arith.mulf %141, %142 : vector<1x128xf32>
    %144 = arith.mulf %139, %139 : vector<1x128xf32>
    %145 = arith.subf %143, %144 : vector<1x128xf32>
    %c0_85 = arith.constant 0 : index
    %c0_86 = arith.constant 0 : index
    %146 = vector.load %arg9[%c0_85, %c0_86] : memref<1x128xf32, #tpu.memory_space<vmem>>, vector<1x128xf32>
    %cst_87 = arith.constant 9.99999974E-6 : f32
    %147 = vector.broadcast %cst_87 : f32 to vector<1x128xf32>
    %148 = arith.addf %145, %147 : vector<1x128xf32>
    %149 = math.rsqrt %148 : vector<1x128xf32>
    %150 = arith.mulf %146, %149 : vector<1x128xf32>
    %c0_88 = arith.constant 0 : index
    %c0_89 = arith.constant 0 : index
    %151 = vector.load %arg10[%c0_88, %c0_89] : memref<1x128xf32, #tpu.memory_space<vmem>>, vector<1x128xf32>
    %152 = arith.mulf %139, %150 : vector<1x128xf32>
    %153 = arith.subf %151, %152 : vector<1x128xf32>
    %154 = vector.broadcast %125 : vector<1x128xf32> to vector<32x128xf32>
    %155 = arith.mulf %105, %154 : vector<32x128xf32>
    %156 = vector.broadcast %128 : vector<1x128xf32> to vector<32x128xf32>
    %157 = arith.addf %155, %156 : vector<32x128xf32>
    %158 = vector.broadcast %150 : vector<1x128xf32> to vector<32x128xf32>
    %159 = arith.mulf %130, %158 : vector<32x128xf32>
    %160 = vector.broadcast %153 : vector<1x128xf32> to vector<32x128xf32>
    %161 = arith.addf %159, %160 : vector<32x128xf32>
    %162 = arith.addf %157, %161 : vector<32x128xf32>
    %cst_90 = arith.constant 0.000000e+00 : f32
    %163 = vector.broadcast %cst_90 : f32 to vector<32x128xf32>
    %164 = arith.maximumf %162, %163 : vector<32x128xf32>
    %c0_91 = arith.constant 0 : index
    %c0_92 = arith.constant 0 : index
    %165 = vector.load %arg11[%c0_91, %c0_92] : memref<32x128xf32, #tpu.memory_space<vmem>>, vector<32x128xf32>
    tpu.vector_store %arg11[%c0_91, %c0_92], %164 {strides = array<i32>} : memref<32x128xf32, #tpu.memory_space<vmem>>, vector<32x128xf32>,
    return
  }
}

</mosaic_0001>

<bundles_post_ra>
// kernel: tpu_custom_call.1
= control target key start
LH: loop header
LB: loop body
LE: loop exit
PB: predicated region body
PF: predicated region fallthrough
CT: control target
= control target key end

     0   :  { %16 = vsyncpa [#allocation3], 0  ;;  %s3190_s0 = inlined_call_operand.hbm [shape: f32[32,64], index: 0, kind: input, shape index: {}]   ;;  %s3191_s1 = inlined_call_operand.hbm [shape: f32[3,64,128], index: 1, kind: input, shape index: {}]   ;;  %s3192_s2 = inlined_call_operand.hbm [shape: f32[3,128,128], index: 2, kind: input, shape index: {}]   ;;  %s3193_s3 = inlined_call_operand.hbm [shape: f32[64,128], index: 3, kind: input, shape index: {}]   ;;  %s3194_s4 = inlined_call_operand.hbm [shape: f32[128,128], index: 4, kind: input, shape index: {}]   ;;  %s3195_s5 = inlined_call_operand.vmem [shape: f32[1,128], index: 5, kind: input, shape index: {}]   ;;  %s3196_s6 = inlined_call_operand.vmem [shape: f32[1,128], index: 6, kind: input, shape index: {}]   ;;  %s3197_s7 = inlined_call_operand.vmem [shape: f32[1,128], index: 7, kind: input, shape index: {}]   ;;  %s3198_s8 = inlined_call_operand.vmem [shape: f32[1,128], index: 8, kind: input, shape index: {}]   ;;  %s3199_s9 = inlined_call_operand.vmem [shape: f32[1,128], index: 9, kind: input, shape index: {}]   ;;  %s3200_s10 = inlined_call_operand.vmem [shape: f32[1,128], index: 10, kind: input, shape index: {}]   ;;  %s3201_s11 = inlined_call_operand.hbm [shape: f32[32,128], index: 11, kind: output, shape index: {}]  }
   0x1   :  { %17 = vsyncpa [#allocation6], 0 }
   0x2   :  { %18 = vsyncpa [#allocation9], 0 }
   0x3   :  { %19 = vsyncpa [#allocation4], 0  ;;  %s2695_s17 = smov [#allocation5]   ;;  %s2696_s19 = smov [#allocation8]  }
   0x4   :  { %s37_s18 = sshll.u32 %s2695_s17, 4  ;;  %s61_s20 = sshll.u32 %s2696_s19, 4  ;;  %s38_s18 = int_to_ptr.vmem [resolvable:$true] %s37_s18  ;;  %s2766_s20 = int_to_ptr.vmem [resolvable:$true] %s61_s20 }
   0x5   :  { %s2555_s23 = scalar_lea.hbm %s3191_s1, 3072 }
   0x6   :  { %p2556_p0 = scmp.ne.s32.totalorder %s3191_s1, %s2555_s23  ;;  %p2559_p1 = scmp.lt.u32.totalorder %s2555_s23, %s3191_s1 }
   0x8   :  { %p2561_p2 = pnand %p2559_p1, %p2556_p0 }
   0xa   :  { %2564 = shalt.err (!%p2561_p2)
}
   0xb   :  { %s2565_s28 = scalar_lea.vmem %s38_s18, 3072  ;;  %p2570_p4 = scmp.lt.s32.totalorder %s38_s18, %s38_s18 }
   0xc   :  { %p2566_p3 = scmp.ne.s32.totalorder %s38_s18, %s2565_s28  ;;  %p2571_p5 = scmp.lt.s32.totalorder %s2565_s28, %s2565_s28 }
   0xe   :  { %p2572_p6 = por %p2571_p5, %p2570_p4 }
  0x10   :  { %p2573_p7 = pnand %p2572_p6, %p2566_p3 }
  0x12   :  { %2576 = shalt.err (!%p2573_p7)
}
  0x13   :  { %s2697_s29 = smov 128   ;;  %s2698_s30 = smov 8  }
  0x14   :  { %43 = dma.hbm_to_vmem [thread:$0]  %s3191_s1, 3072, %s38_s18, [#allocation6], %s2697_s29, %s2697_s29, %s2698_s30  }
  0x15   :  { %s2577_s16 = scalar_lea.hbm %s3193_s3, 1024 }
  0x16   :  { %p2578_p8 = scmp.ne.s32.totalorder %s3193_s3, %s2577_s16  ;;  %p2581_p9 = scmp.lt.u32.totalorder %s2577_s16, %s3193_s3 }
  0x18   :  { %p2583_p10 = pnand %p2581_p9, %p2578_p8 }
  0x1a   :  { %2586 = shalt.err (!%p2583_p10)
}
  0x1b   :  { %s2587_s23 = scalar_lea.vmem %s2766_s20, 1024  ;;  %p2592_p12 = scmp.lt.s32.totalorder %s2766_s20, %s2766_s20 }
  0x1c   :  { %p2588_p11 = scmp.ne.s32.totalorder %s2766_s20, %s2587_s23  ;;  %p2593_p13 = scmp.lt.s32.totalorder %s2587_s23, %s2587_s23 }
  0x1e   :  { %p2594_p0 = por %p2593_p13, %p2592_p12 }
  0x20   :  { %p2595_p1 = pnand %p2594_p0, %p2588_p11 }
  0x22   :  { %2598 = shalt.err (!%p2595_p1)
}
  0x23   :  { %67 = dma.hbm_to_vmem [thread:$0]  %s3193_s3, 1024, %s2766_s20, [#allocation9], %s2697_s29, %s2697_s29, %s2698_s30  }
  0x24   :  { %s2699_s24 = smov [#allocation2]   ;;  %s2700_s26 = smov [#allocation7]  }
  0x25   :  { %s25_s25 = sshll.u32 %s2699_s24, 4  ;;  %s49_s27 = sshll.u32 %s2700_s26, 4  ;;  %s26_s25 = int_to_ptr.vmem [resolvable:$true] %s25_s25  ;;  %s2803_s27 = int_to_ptr.vmem [resolvable:$true] %s49_s27 }
  0x26   :  { %s2599_s13 = scalar_lea.hbm %s3190_s0, 512 }
  0x27   :  { %p2600_p2 = scmp.ne.s32.totalorder %s3190_s0, %s2599_s13  ;;  %p2603_p3 = scmp.lt.u32.totalorder %s2599_s13, %s3190_s0 }
  0x29   :  { %p2605_p4 = pnand %p2603_p3, %p2600_p2 }
  0x2b   :  { %2608 = shalt.err (!%p2605_p4)
}
  0x2c   :  { %s2609_s3 = scalar_lea.vmem %s26_s25, 512  ;;  %p2614_p6 = scmp.lt.s32.totalorder %s26_s25, %s26_s25 }
  0x2d   :  { %p2610_p5 = scmp.ne.s32.totalorder %s26_s25, %s2609_s3  ;;  %p2615_p7 = scmp.lt.s32.totalorder %s2609_s3, %s2609_s3 }
  0x2f   :  { %p2616_p8 = por %p2615_p7, %p2614_p6 }
  0x31   :  { %p2617_p9 = pnand %p2616_p8, %p2610_p5 }
  0x33   :  { %2620 = shalt.err (!%p2617_p9)
}
  0x34   :  { %31 = dma.hbm_to_vmem [thread:$0]  %s3190_s0, 512, %s26_s25, [#allocation3], %s2697_s29, %s2697_s29, %s2698_s30  }
  0x35   :  { %s2621_s23 = scalar_lea.hbm %s3192_s2, 6144 }
  0x36   :  { %p2622_p10 = scmp.ne.s32.totalorder %s3192_s2, %s2621_s23  ;;  %p2625_p11 = scmp.lt.u32.totalorder %s2621_s23, %s3192_s2 }
  0x38   :  { %p2627_p12 = pnand %p2625_p11, %p2622_p10 }
  0x3a   :  { %2630 = shalt.err (!%p2627_p12)
}
  0x3b   :  { %s2631_s28 = scalar_lea.vmem %s2803_s27, 6144  ;;  %p2636_p0 = scmp.lt.s32.totalorder %s2803_s27, %s2803_s27 }
  0x3c   :  { %p2632_p13 = scmp.ne.s32.totalorder %s2803_s27, %s2631_s28  ;;  %p2637_p1 = scmp.lt.s32.totalorder %s2631_s28, %s2631_s28 }
  0x3e   :  { %p2638_p2 = por %p2637_p1, %p2636_p0 }
  0x40   :  { %p2639_p3 = pnand %p2638_p2, %p2632_p13 }
  0x42   :  { %2642 = shalt.err (!%p2639_p3)
}
  0x43   :  { %55 = dma.hbm_to_vmem [thread:$0]  %s3192_s2, 6144, %s2803_s27, [#allocation6], %s2697_s29, %s2697_s29, %s2698_s30  }
  0x44   :  { %s2701_s12 = smov [#allocation10]   ;;  %s2643_s16 = scalar_lea.hbm %s3194_s4, 2048 }
  0x45   :  { %s73_s13 = sshll.u32 %s2701_s12, 4  ;;  %p2644_p4 = scmp.ne.s32.totalorder %s3194_s4, %s2643_s16  ;;  %s74_s13 = int_to_ptr.vmem [resolvable:$true] %s73_s13 }
  0x46   :  { %p2647_p5 = scmp.lt.u32.totalorder %s2643_s16, %s3194_s4 }
  0x48   :  { %p2649_p6 = pnand %p2647_p5, %p2644_p4 }
  0x4a   :  { %2652 = shalt.err (!%p2649_p6)
}
  0x4b   :  { %s2653_s21 = scalar_lea.vmem %s74_s13, 2048  ;;  %p2658_p8 = scmp.lt.s32.totalorder %s74_s13, %s74_s13 }
  0x4c   :  { %p2654_p7 = scmp.ne.s32.totalorder %s74_s13, %s2653_s21  ;;  %p2659_p9 = scmp.lt.s32.totalorder %s2653_s21, %s2653_s21 }
  0x4e   :  { %p2660_p10 = por %p2659_p9, %p2658_p8 }
  0x50   :  { %p2661_p11 = pnand %p2660_p10, %p2654_p7 }
  0x52   :  { %2664 = shalt.err (!%p2661_p11)
}
  0x53   :  { %79 = dma.hbm_to_vmem [thread:$0]  %s3194_s4, 2048, %s74_s13, [#allocation9], %s2697_s29, %s2697_s29, %s2698_s30  }
  0x54   :  { %2687 = dma.done.wait [#allocation3], 512  }
  0x55   :  { %2688 = vsyncadd [#allocation3], 4294966784 }
  0x56   :  { %2689 = dma.done.wait [#allocation6], 9216  }
  0x57   :  { %2690 = vsyncadd [#allocation6], 4294958080 }
  0x58   :  { %2691 = dma.done.wait [#allocation9], 3072  }
  0x59   :  { %2692 = vsyncadd [#allocation9], 4294964224  ;;  %v2702_v0 = vmov 0.0|0.0   ;;  %v207_v1 = vld [vmem:[#allocation5 + $0x40] sm:$0xff]  ;;  %v208_v2 = vld [vmem:[#allocation5 + $0x48] sm:$0xff]  ;;  %vm215_vm0 = vcmask 523264   ;;  %v111_v13 = vlaneseq }
  0x5a   :  { %2266 = vmatprep.subr.bf16.mxu1 %v2702_v0  ;;  %v209_v3 = vld [vmem:[#allocation5 + $0x50] sm:$0xff]  ;;  %v2218_v4 = vpack.c.bf16 %v208_v2, %v207_v1  ;;  %v210_v5 = vld [vmem:[#allocation5 + $0x58] sm:$0xff]  ;;  %v211_v7 = vld [vmem:[#allocation5 + $0x60] sm:$0xff]  ;;  %vm2703_vm7 = vmmov 0  }
  0x5b   :  { %v2222_v6 = vpack.c.bf16 %v210_v5, %v209_v3  ;;  %v212_v8 = vld [vmem:[#allocation5 + $0x68] sm:$0xff]  ;;  %v2856_v9 = vld [vmem:[#allocation2] sm:$0xff]  ;;  %v213_v11 = vld [vmem:[#allocation5 + $0x70] sm:$0xff]  ;;  %v2860_v19 = vshrl.u32 %v111_v13, 7 }
  0x5c   :  { %2219 = vmatprep.subr.bf16.mxu0 %v2218_v4  ;;  %1822 = vmatprep.mubr.msk.f32.mxu0 %vm215_vm0, %v2856_v9  ;;  %v2226_v10 = vpack.c.bf16 %v212_v8, %v211_v7  ;;  %v214_v12 = vld [vmem:[#allocation5 + $0x78] sm:$0xff]  ;;  %v198_v15 = vld [vmem:[#allocation5] sm:$0xff]  ;;  %v543_v17 = vld [vmem:[#allocation10 + $0x8] sm:$0xff]  ;;  %v168_v27 = vrot.slane %v2856_v9, 7  ;;  %v185_v58 = vrot.slane %v2856_v9, 1 }
  0x5d   :  { %2221 = vmatpush3.bf16.msra.mxu0 %v2218_v4  ;;  %v2230_v14 = vpack.c.bf16 %v214_v12, %v213_v11  ;;  %v542_v16 = vld [vmem:[#allocation10] sm:$0xff]  ;;  %v199_v18 = vld [vmem:[#allocation5 + $0x8] sm:$0xff]  ;;  %v544_v20 = vld [vmem:[#allocation10 + $0x10] sm:$0xff]  ;;  %v120_v30 = vand.u32 15, %v2860_v19  ;;  %vm172_vm1 = vcmp.lt.s32.totalorder %v2860_v19, 1  ;;  %v114_v45 = vadd.s32 16, %v2860_v19 }
  0x5e   :  { %2223 = vmatprep.subr.bf16.mxu0 %v2222_v6  ;;  %v545_v21 = vld [vmem:[#allocation10 + $0x18] sm:$0xff]  ;;  %v2864_v23 = vpack.c.bf16 %v543_v17, %v542_v16  ;;  %v2234_v24 = vpack.c.bf16 %v199_v18, %v198_v15  ;;  %v200_v25 = vld [vmem:[#allocation5 + $0x10] sm:$0xff]  ;;  %v546_v31 = vld [vmem:[#allocation10 + $0x20] sm:$0xff]  ;;  %vm189_vm4 = vcmp.lt.s32.totalorder %v2860_v19, 7  ;;  %v113_v4 = vadd.s32 8, %v2860_v19 }
  0x5f   :  { %v2862_v22 = vld [vmem:[#allocation2 + $0x18] sm:$0xff]  ;;  %v2867_v26 = vpack.c.bf16 %v545_v21, %v544_v20  ;;  %v547_v32 = vld [vmem:[#allocation10 + $0x28] sm:$0xff]  ;;  %v2876_v35 = vld [vmem:[#allocation2 + $0x10] sm:$0xff]  ;;  %vm2881_vm2 = vcmp.gt.s32.totalorder %v120_v30, 0  ;;  %v134_v50 = vand.u32 15, %v114_v45  ;;  %v115_v11 = vadd.s32 24, %v2860_v19 }
  0x60   :  { %2268 = vmatpush3.bf16.msra.mxu1 %v2864_v23  ;;  %v201_v28 = vld [vmem:[#allocation5 + $0x18] sm:$0xff]  ;;  %v171_v29 = vrot.slane %v2862_v22, 7  ;;  %v2874_v33 = vld [vmem:[#allocation2 + $0x8] sm:$0xff]  ;;  %v2879_v36 = vpack.c.bf16 %v547_v32, %v546_v31  ;;  %v202_v37 = vld [vmem:[#allocation5 + $0x20] sm:$0xff]  ;;  %v170_v47 = vrot.slane %v2876_v35, 7  ;;  %v187_v7 = vrot.slane %v2876_v35, 1 }
  0x61   :  { %2225 = vmatpush3.bf16.msra.mxu0 %v2222_v6  ;;  %2269 = vmatprep.subr.bf16.mxu1 %v2702_v0  ;;  %v2238_v34 = vpack.c.bf16 %v201_v28, %v200_v25  ;;  %v203_v38 = vld [vmem:[#allocation5 + $0x28] sm:$0xff]  ;;  %v204_v43 = vld [vmem:[#allocation5 + $0x30] sm:$0xff]  ;;  %v205_v44 = vld [vmem:[#allocation5 + $0x38] sm:$0xff]  ;;  %v169_v51 = vrot.slane %v2874_v33, 7  ;;  %vm2902_vm3 = vcmp.gt.s32.totalorder %v134_v50, 0  ;;  %v186_v59 = vrot.slane %v2874_v33, 1 }
  0x62   :  { %2227 = vmatprep.subr.bf16.mxu0 %v2226_v10  ;;  %v176_v40 = vsel %vm172_vm1, %v171_v29, %v168_v27  ;;  %v2242_v41 = vpack.c.bf16 %v203_v38, %v202_v37  ;;  %v2246_v46 = vpack.c.bf16 %v205_v44, %v204_v43  ;;  %v411_v48 = vld [vmem:[#allocation5 + $0x80] sm:$0xff]  ;;  %v412_v49 = vld [vmem:[#allocation5 + $0x88] sm:$0xff]  ;;  %v413_v53 = vld [vmem:[#allocation5 + $0x90] sm:$0xff]  ;;  %v173_v1 = vsel %vm172_vm1, %v170_v47, %v171_v29 }
  0x63   :  { %v177_v42 = vsel %vm2881_vm2, %v176_v40, 0.0  ;;  %v2250_v52 = vpack.c.bf16 %v412_v49, %v411_v48  ;;  %v414_v54 = vld [vmem:[#allocation5 + $0x98] sm:$0xff]  ;;  %v174_v56 = vsel %vm172_vm1, %v169_v51, %v170_v47  ;;  %v175_v57 = vsel %vm172_vm1, %v168_v27, %v169_v51  ;;  %v415_v62 = vld [vmem:[#allocation5 + $0xa0] sm:$0xff]  ;;  %v416_v63 = vld [vmem:[#allocation5 + $0xa8] sm:$0xff] }
  0x64   :  { %2271 = vmatpush3.bf16.msra.mxu1 %v2867_v26  ;;  %v2254_v60 = vpack.c.bf16 %v414_v54, %v413_v53  ;;  %v179_v61 = vsel %vm2902_vm3, %v174_v56, 0.0  ;;  %v2258_v2 = vpack.c.bf16 %v416_v63, %v415_v62  ;;  %v192_v3 = vsel %vm189_vm4, %v185_v58, %v186_v59  ;;  %v417_v5 = vld [vmem:[#allocation5 + $0xb0] sm:$0xff]  ;;  %v418_v6 = vld [vmem:[#allocation5 + $0xb8] sm:$0xff]  ;;  %v550_v28 = vld [vmem:[#allocation10 + $0x40] sm:$0xff] }
  0x65   :  { %2229 = vmatpush3.bf16.msra.mxu0 %v2226_v10  ;;  %2272 = vmatprep.subr.bf16.mxu1 %v2702_v0  ;;  %v2262_v8 = vpack.c.bf16 %v418_v6, %v417_v5  ;;  %v127_v10 = vand.u32 15, %v113_v4  ;;  %v188_v12 = vrot.slane %v2862_v22, 1  ;;  %v141_v15 = vand.u32 15, %v115_v11  ;;  %v549_v25 = vld [vmem:[#allocation10 + $0x38] sm:$0xff]  ;;  %v551_v29 = vld [vmem:[#allocation10 + $0x48] sm:$0xff]  ;;  %v552_v31 = vld [vmem:[#allocation10 + $0x50] sm:$0xff] }
  0x66   :  { %2231 = vmatprep.subr.bf16.mxu0 %v2230_v14  ;;  %v2952_v30 = vpack.c.bf16 %v551_v29, %v550_v28  ;;  %v553_v32 = vld [vmem:[#allocation10 + $0x58] sm:$0xff]  ;;  %v554_v37 = vld [vmem:[#allocation10 + $0x60] sm:$0xff]  ;;  %v555_v38 = vld [vmem:[#allocation10 + $0x68] sm:$0xff]  ;;  %v2704_v44 = vmov 0.0  }
  0x67   :  { %vm2927_vm5 = vcmp.lt.s32.totalorder %v127_v10, 15  ;;  %v190_v17 = vsel %vm189_vm4, %v187_v7, %v188_v12  ;;  %vm2937_vm6 = vcmp.lt.s32.totalorder %v141_v15, 15  ;;  %v193_v20 = vsel %vm189_vm4, %v188_v12, %v185_v58  ;;  %1904 = vmatprep.mubr.msk.f32.mxu1 %vm2703_vm7, %v2704_v44  ;;  %v774_v10 = vld [vmem:[#allocation7 + $0x80] sm:$0xff]  ;;  %v775_v11 = vld [vmem:[#allocation7 + $0x88] sm:$0xff]  ;;  %v777_v15 = vld [vmem:[#allocation7 + $0x98] sm:$0xff] }
  0x68   :  { %2274 = vmatpush3.bf16.msra.mxu1 %v2879_v36  ;;  %v197_v21 = vsel %vm2937_vm6, %v193_v20, 0.0  ;;  %v2960_v40 = vpack.c.bf16 %v555_v38, %v554_v37  ;;  %v2314_v12 = vpack.c.bf16 %v775_v11, %v774_v10  ;;  %v779_v20 = vld [vmem:[#allocation7 + $0xa8] sm:$0xff]  ;;  %v782_v29 = vld [vmem:[#allocation7 + $0xc0] sm:$0xff]  ;;  %v784_v37 = vld [vmem:[#allocation7 + $0xd0] sm:$0xff] }
  0x69   :  { %2233 = vmatpush3.bf16.msra.mxu0 %v2230_v14  ;;  %2275 = vmatprep.subr.bf16.mxu1 %v2702_v0  ;;  %v191_v14 = vsel %vm189_vm4, %v186_v59, %v187_v7  ;;  %v785_v38 = vld [vmem:[#allocation7 + $0xd8] sm:$0xff] }
  0x6a   :  { %2235 = vmatprep.subr.bf16.mxu0 %v2234_v24  ;;  %v195_v16 = vsel %vm2927_vm5, %v191_v14, 0.0  ;;  %v776_v14 = vld [vmem:[#allocation7 + $0x90] sm:$0xff]  ;;  %v772_v39 = vld [vmem:[#allocation7 + $0x78] sm:$0xff] }
  0x6c   :  { %1823 = vmatmul.mubr.msk.f32.vlgmr.msra.gmra.mrb[0].mxu0 %vm215_vm0, %v2874_v33 }
  0x6d   :  { %2237 = vmatpush3.bf16.msra.mxu0 %v2234_v24  ;;  %1825 = vmatprep.mubr.msk.f32.mxu0 %vm215_vm0, %v2876_v35  ;;  %v548_v24 = vld [vmem:[#allocation10 + $0x30] sm:$0xff] }
  0x6e   :  { %2239 = vmatprep.subr.bf16.mxu0 %v2238_v34  ;;  %v2948_v27 = vpack.c.bf16 %v549_v25, %v548_v24  ;;  %v780_v24 = vld [vmem:[#allocation7 + $0xb0] sm:$0xff]  ;;  %v781_v25 = vld [vmem:[#allocation7 + $0xb8] sm:$0xff] }
  0x6f   :  { %v2326_v28 = vpack.c.bf16 %v781_v25, %v780_v24 }
  0x70   :  { %1826 = vmatmul.mubr.msk.f32.gmra.mrb[2].mxu0 %vm215_vm0, %v2862_v22  ;;  %2277 = vmatpush3.bf16.msra.mxu1 %v2948_v27 }
  0x71   :  { %2241 = vmatpush3.bf16.msra.mxu0 %v2238_v34  ;;  %1844 = vmatprep.mubr.msk.f32.mxu0 %vm215_vm0, %v177_v42  ;;  %v2956_v34 = vpack.c.bf16 %v553_v32, %v552_v31  ;;  %v557_v42 = vld [vmem:[#allocation10 + $0x78] sm:$0xff]  ;;  %v783_v31 = vld [vmem:[#allocation7 + $0xc8] sm:$0xff] }
  0x72   :  { %2243 = vmatprep.subr.bf16.mxu0 %v2242_v41  ;;  %2278 = vmatprep.subr.bf16.mxu1 %v2702_v0  ;;  %v2330_v32 = vpack.c.bf16 %v783_v31, %v782_v29  ;;  %v760_v29 = vld [vmem:[#allocation7 + $0x18] sm:$0xff] }
  0x74   :  { %2280 = vmatpush3.bf16.msra.mxu1 %v2952_v30 }
  0x75   :  { %2245 = vmatpush3.bf16.msra.mxu0 %v2242_v41  ;;  %2281 = vmatprep.subr.bf16.mxu1 %v2702_v0  ;;  %v556_v41 = vld [vmem:[#allocation10 + $0x70] sm:$0xff] }
  0x76   :  { %2247 = vmatprep.subr.bf16.mxu0 %v2246_v46  ;;  %v2964_v43 = vpack.c.bf16 %v557_v42, %v556_v41  ;;  %v2334_v41 = vpack.c.bf16 %v785_v38, %v784_v37  ;;  %v786_v42 = vld [vmem:[#allocation7 + $0xe0] sm:$0xff] }
  0x78   :  { %2283 = vmatpush3.bf16.msra.mxu1 %v2956_v34 }
  0x79   :  { %2249 = vmatpush3.bf16.msra.mxu0 %v2246_v46  ;;  %2284 = vmatprep.subr.bf16.mxu1 %v2702_v0 }
  0x7a   :  { %2251 = vmatprep.subr.bf16.mxu0 %v2250_v52 }
  0x7c   :  { %1845 = vmatmul.mubr.msk.f32.vlgmr.msra.gmra.mrb[0].mxu0 %vm215_vm0, %v175_v57  ;;  %2286 = vmatpush3.bf16.msra.mxu1 %v2960_v40 }
  0x7d   :  { %2253 = vmatpush3.bf16.msra.mxu0 %v2250_v52  ;;  %1847 = vmatprep.mubr.msk.f32.mxu0 %vm215_vm0, %v179_v61 }
  0x7e   :  { %2255 = vmatprep.subr.bf16.mxu0 %v2254_v60  ;;  %2287 = vmatprep.subr.bf16.mxu1 %v2702_v0 }
  0x80   :  { %1848 = vmatmul.mubr.msk.f32.gmra.mrb[2].mxu0 %vm215_vm0, %v173_v1  ;;  %2289 = vmatpush3.bf16.msra.mxu1 %v2964_v43 }
  0x81   :  { %2257 = vmatpush3.bf16.msra.mxu0 %v2254_v60  ;;  %1866 = vmatprep.mubr.msk.f32.mxu0 %vm215_vm0, %v192_v3 }
  0x82   :  { %2259 = vmatprep.subr.bf16.mxu0 %v2258_v2  ;;  %2290 = vmatprep.subr.bf16.mxu1 %v2702_v0 }
  0x85   :  { %2261 = vmatpush3.bf16.msra.mxu0 %v2258_v2 }
  0x86   :  { %2263 = vmatprep.subr.bf16.mxu0 %v2262_v8 }
  0x89   :  { %2265 = vmatpush3.bf16.msra.mxu0 %v2262_v8 }
  0x8a   :  { %2315 = vmatprep.subr.bf16.mxu0 %v2314_v12 }
  0x8c   :  { %1867 = vmatmul.mubr.msk.f32.vlgmr.msra.gmra.mrb[0].mxu0 %vm215_vm0, %v195_v16  ;;  %v2318_v16 = vpack.c.bf16 %v777_v15, %v776_v14 }
  0x8d   :  { %1869 = vmatprep.mubr.msk.f32.mxu0 %vm215_vm0, %v190_v17  ;;  %2317 = vmatpush3.bf16.msra.mxu0 %v2314_v12  ;;  %v778_v17 = vld [vmem:[#allocation7 + $0xa0] sm:$0xff] }
  0x8e   :  { %2319 = vmatprep.subr.bf16.mxu0 %v2318_v16 }
  0x90   :  { %1870 = vmatmul.mubr.msk.f32.gmra.mrb[2].mxu0 %vm215_vm0, %v197_v21  ;;  %v2322_v21 = vpack.c.bf16 %v779_v20, %v778_v17 }
  0x91   :  { %2321 = vmatpush3.bf16.msra.mxu0 %v2318_v16 }
  0x92   :  { %2323 = vmatprep.subr.bf16.mxu0 %v2322_v21 }
  0x95   :  { %2325 = vmatpush3.bf16.msra.mxu0 %v2322_v21 }
  0x96   :  { %2327 = vmatprep.subr.bf16.mxu0 %v2326_v28 }
  0x99   :  { %2329 = vmatpush3.bf16.msra.mxu0 %v2326_v28  ;;  %v759_v28 = vld [vmem:[#allocation7 + $0x10] sm:$0xff] }
  0x9a   :  { %2331 = vmatprep.subr.bf16.mxu0 %v2330_v32 }
  0x9d   :  { %2333 = vmatpush3.bf16.msra.mxu0 %v2330_v32 }
  0x9e   :  { %2335 = vmatprep.subr.bf16.mxu0 %v2334_v41 }
  0xa1   :  { %2337 = vmatpush3.bf16.msra.mxu0 %v2334_v41 }
 0x15f   :  { %v2970_v45 = vpop.f32.mrb[0].mxu0 }
 0x160   :  { %v530_v46 = vmul.f32 %v2970_v45, %v2970_v45  ;;  %v2974_v47 = vpop.f32.mrb[1].mxu0 }
 0x161   :  { %v520_v48 = vadd.f32 %v2970_v45, %v2974_v47  ;;  %v529_v49 = vmul.f32 %v2974_v47, %v2974_v47 }
 0x163   :  { %v533_v50 = vadd.f32 %v530_v46, %v529_v49  ;;  %v2980_v51 = vpop.f32.mrb[2].mxu0  ;;  %v787_v46 = vld [vmem:[#allocation7 + $0xe8] sm:$0xff] }
 0x164   :  { %v2982_v52 = vpop.f32.mrb[3].mxu0  ;;  %v532_v56 = vmul.f32 %v2980_v51, %v2980_v51  ;;  %v2338_v49 = vpack.c.bf16 %v787_v46, %v786_v42  ;;  %v2350_v42 = vpack.c.bf16 %v760_v29, %v759_v28  ;;  %v762_v46 = vld [vmem:[#allocation7 + $0x28] sm:$0xff]  ;;  %v964_v28 = vld [vmem:[#allocation7 + $0x118] sm:$0xff] }
 0x165   :  { %v521_v53 = vadd.f32 %v520_v48, %v2982_v52  ;;  %v531_v54 = vmul.f32 %v2982_v52, %v2982_v52  ;;  %v788_v48 = vld [vmem:[#allocation7 + $0xf0] sm:$0xff] }
 0x166   :  { %2339 = vmatprep.subr.bf16.mxu0 %v2338_v49 }
 0x167   :  { %v522_v57 = vadd.f32 %v2980_v51, %v521_v53  ;;  %v534_v58 = vadd.f32 %v533_v50, %v531_v54  ;;  %v789_v50 = vld [vmem:[#allocation7 + $0xf8] sm:$0xff]  ;;  %2341 = vmatpush3.bf16.msra.mxu0 %v2338_v49  ;;  %v757_v54 = vld [vmem:[#allocation7] sm:$0xff] }
 0x168   :  { %v2342_v53 = vpack.c.bf16 %v789_v50, %v788_v48 }
 0x169   :  { %v523_v59 = vrot.slane %v522_v57, 4  ;;  %v535_v60 = vadd.f32 %v534_v58, %v532_v56  ;;  %v758_v56 = vld [vmem:[#allocation7 + $0x8] sm:$0xff] }
 0x16a   :  { %2343 = vmatprep.subr.bf16.mxu0 %v2342_v53 }
 0x16b   :  { %v524_v61 = vadd.f32 %v523_v59, %v522_v57  ;;  %v536_v3 = vrot.slane %v535_v60, 4  ;;  %2345 = vmatpush3.bf16.msra.mxu0 %v2342_v53  ;;  %v2346_v57 = vpack.c.bf16 %v758_v56, %v757_v54 }
 0x16d   :  { %v525_v62 = vrot.slane %v524_v61, 2  ;;  %v537_v4 = vadd.f32 %v536_v3, %v535_v60  ;;  %2347 = vmatprep.subr.bf16.mxu0 %v2346_v57 }
 0x16f   :  { %v526_v63 = vadd.f32 %v525_v62, %v524_v61  ;;  %v538_v5 = vrot.slane %v537_v4, 2 }
 0x171   :  { %v527_v1 = vrot.slane %v526_v63, 1  ;;  %v539_v6 = vadd.f32 %v538_v5, %v537_v4  ;;  %v702_v4 = vld [vmem:[%s3195_s5] sm:$0x1]  ;;  %v3030_v5 = vsub.s32 0, %v2860_v19 }
 0x172   :  { %v769_v19 = vld [vmem:[#allocation7 + $0x60] sm:$0xff] }
 0x173   :  { %v528_v2 = vadd.f32 %v527_v1, %v526_v63  ;;  %v540_v7 = vrot.slane %v539_v6, 1 }
 0x175   :  { %1905 = vmatmul.mubr.f32.vlgmr.msra.gmra.mrb[0].mxu1 %v528_v2  ;;  %v541_v8 = vadd.f32 %v540_v7, %v539_v6 }
 0x176   :  { %2292 = vmatpush3.bf16.msra.mxu1 %v2864_v23  ;;  %1939 = vmatprep.mubr.msk.f32.mxu1 %vm2703_vm7, %v2704_v44 }
 0x177   :  { %2293 = vmatprep.subr.bf16.mxu1 %v2702_v0 }
 0x17a   :  { %2295 = vmatpush3.bf16.msra.mxu1 %v2867_v26 }
 0x17b   :  { %2296 = vmatprep.subr.bf16.mxu1 %v2702_v0 }
 0x17e   :  { %2298 = vmatpush3.bf16.msra.mxu1 %v2879_v36 }
 0x17f   :  { %2299 = vmatprep.subr.bf16.mxu1 %v2702_v0 }
 0x182   :  { %2301 = vmatpush3.bf16.msra.mxu1 %v2948_v27 }
 0x183   :  { %2302 = vmatprep.subr.bf16.mxu1 %v2702_v0 }
 0x186   :  { %2304 = vmatpush3.bf16.msra.mxu1 %v2952_v30 }
 0x187   :  { %2305 = vmatprep.subr.bf16.mxu1 %v2702_v0 }
 0x18a   :  { %2307 = vmatpush3.bf16.msra.mxu1 %v2956_v34 }
 0x18b   :  { %2308 = vmatprep.subr.bf16.mxu1 %v2702_v0 }
 0x18e   :  { %2310 = vmatpush3.bf16.msra.mxu1 %v2960_v40 }
 0x18f   :  { %2311 = vmatprep.subr.bf16.mxu1 %v2702_v0 }
 0x192   :  { %2313 = vmatpush3.bf16.msra.mxu1 %v2964_v43 }
 0x193   :  { %2410 = vmatprep.subr.bf16.mxu1 %v2702_v0 }
 0x195   :  { %1940 = vmatmul.mubr.f32.vlgmr.msra.gmra.mrb[2].mxu1 %v541_v8  ;;  %v706_v8 = vld [vmem:[%s3196_s6] sm:$0x1] }
 0x196   :  { %2412 = vmatpush3.bf16.msra.mxu1 %v2864_v23  ;;  %2088 = vmatprep.mubr.msk.f32.mxu1 %vm2703_vm7, %v2704_v44 }
 0x197   :  { %2413 = vmatprep.subr.bf16.mxu1 %v2702_v0 }
 0x19a   :  { %2415 = vmatpush3.bf16.msra.mxu1 %v2867_v26 }
 0x19b   :  { %2416 = vmatprep.subr.bf16.mxu1 %v2702_v0 }
 0x19e   :  { %2418 = vmatpush3.bf16.msra.mxu1 %v2879_v36 }
 0x19f   :  { %2419 = vmatprep.subr.bf16.mxu1 %v2702_v0 }
 0x1a2   :  { %2421 = vmatpush3.bf16.msra.mxu1 %v2948_v27 }
 0x1a3   :  { %2422 = vmatprep.subr.bf16.mxu1 %v2702_v0 }
 0x1a6   :  { %2424 = vmatpush3.bf16.msra.mxu1 %v2952_v30 }
 0x1a7   :  { %2425 = vmatprep.subr.bf16.mxu1 %v2702_v0 }
 0x1aa   :  { %2427 = vmatpush3.bf16.msra.mxu1 %v2956_v34 }
 0x1ab   :  { %2428 = vmatprep.subr.bf16.mxu1 %v2702_v0 }
 0x1ae   :  { %2430 = vmatpush3.bf16.msra.mxu1 %v2960_v40 }
 0x1af   :  { %2431 = vmatprep.subr.bf16.mxu1 %v2702_v0 }
 0x1b2   :  { %2433 = vmatpush3.bf16.msra.mxu1 %v2964_v43 }
 0x1b3   :  { %2434 = vmatprep.subr.bf16.mxu1 %v2702_v0 }
 0x248   :  { %v624_v58 = vpop.f32.mrb[0].mxu1 }
 0x249   :  { %v1906_v59 = vpop.f32.mrb[1].mxu1  ;;  %v628_v60 = vmul.f32 0.001953125, %v624_v58 }
 0x24b   :  { %v700_v62 = vmul.f32 %v628_v60, %v628_v60 }
 0x268   :  { %v695_v61 = vpop.f32.mrb[2].mxu1 }
 0x269   :  { %v699_v63 = vmul.f32 0.001953125, %v695_v61  ;;  %v1941_v1 = vpop.f32.mrb[3].mxu1 }
 0x26a   :  { %v764_v1 = vld [vmem:[#allocation7 + $0x38] sm:$0xff] }
 0x26b   :  { %v701_v2 = vsub.f32 %v699_v63, %v700_v62  ;;  %v763_v63 = vld [vmem:[#allocation7 + $0x30] sm:$0xff] }
 0x26d   :  { %v703_v3 = vadd.f32 1e-05, %v701_v2 }
 0x26f   :  { %2549 = vrsqrt.f32 %v703_v3 }
 0x279   :  { %v2550_v6 = vpop.eup %2549 }
 0x27a   :  { %v705_v7 = vmul.f32 %v2550_v6, %v702_v4  ;;  %v2358_v4 = vpack.c.bf16 %v764_v1, %v763_v63  ;;  %v765_v6 = vld [vmem:[#allocation7 + $0x40] sm:$0xff] }
 0x27c   :  { %v707_v10 = vmul.f32 %v705_v7, %v628_v60  ;;  %v713_v11 = vrot.slane %v705_v7, %v3030_v5  ;;  %v766_v7 = vld [vmem:[#allocation7 + $0x48] sm:$0xff] }
 0x27e   :  { %v708_v12 = vsub.f32 %v706_v8, %v707_v10  ;;  %v715_v14 = vmul.f32 %v713_v11, %v2974_v47  ;;  %v716_v15 = vmul.f32 %v2970_v45, %v713_v11  ;;  %v717_v16 = vmul.f32 %v713_v11, %v2982_v52  ;;  %v761_v47 = vld [vmem:[#allocation7 + $0x20] sm:$0xff]  ;;  %v767_v10 = vld [vmem:[#allocation7 + $0x50] sm:$0xff] }
 0x27f   :  { %v718_v17 = vmul.f32 %v2980_v51, %v713_v11  ;;  %v2354_v58 = vpack.c.bf16 %v762_v46, %v761_v47  ;;  %v2362_v8 = vpack.c.bf16 %v766_v7, %v765_v6  ;;  %v768_v11 = vld [vmem:[#allocation7 + $0x58] sm:$0xff]  ;;  %v969_v47 = vld [vmem:[#allocation7 + $0x140] sm:$0xff]  ;;  %v970_v46 = vld [vmem:[#allocation7 + $0x148] sm:$0xff] }
 0x280   :  { %v723_v20 = vrot.slane %v708_v12, %v3030_v5  ;;  %v2366_v12 = vpack.c.bf16 %v768_v11, %v767_v10 }
 0x282   :  { %v725_v21 = vadd.f32 %v723_v20, %v715_v14  ;;  %v726_v24 = vadd.f32 %v723_v20, %v716_v15  ;;  %v727_v25 = vadd.f32 %v723_v20, %v717_v16  ;;  %v728_v31 = vadd.f32 %v723_v20, %v718_v17  ;;  %v770_v14 = vld [vmem:[#allocation7 + $0x68] sm:$0xff]  ;;  %v771_v16 = vld [vmem:[#allocation7 + $0x70] sm:$0xff]  ;;  %v961_v20 = vld [vmem:[#allocation7 + $0x100] sm:$0xff] }
 0x283   :  { %v2370_v15 = vpack.c.bf16 %v770_v14, %v769_v19  ;;  %v2374_v17 = vpack.c.bf16 %v772_v39, %v771_v16 }
 0x284   :  { %v729_v32 = vmax.f32 %v725_v21, 0.0  ;;  %v730_v37 = vmax.f32 %v726_v24, 0.0  ;;  %v731_v38 = vmax.f32 %v727_v25, 0.0  ;;  %v732_v41 = vmax.f32 %v728_v31, 0.0  ;;  %v962_v21 = vld [vmem:[#allocation7 + $0x108] sm:$0xff]  ;;  %v963_v25 = vld [vmem:[#allocation7 + $0x110] sm:$0xff] }
 0x285   :  { %v2378_v24 = vpack.c.bf16 %v962_v21, %v961_v20  ;;  %v2382_v29 = vpack.c.bf16 %v964_v28, %v963_v25  ;;  %v965_v31 = vld [vmem:[#allocation7 + $0x120] sm:$0xff]  ;;  %v1240_v20 = vld [vmem:[#allocation8 + $0x8] sm:$0xff]  ;;  %v1241_v25 = vld [vmem:[#allocation8 + $0x10] sm:$0xff] }
 0x286   :  { %1974 = vmatprep.mubr.f32.mxu0 %v729_v32  ;;  %v747_v45 = vrot.slane %v731_v38, 1  ;;  %v733_v52 = vrot.slane %v729_v32, 7  ;;  %v736_v48 = vrot.slane %v732_v41, 7  ;;  %v734_v51 = vrot.slane %v730_v37, 7  ;;  %v1242_v28 = vld [vmem:[#allocation8 + $0x18] sm:$0xff] }
 0x287   :  { %1975 = vmatmul.mubr.f32.vlgmr.msra.gmra.mrb[4].mxu0 %v730_v37  ;;  %v735_v49 = vrot.slane %v731_v38, 7  ;;  %v745_v50 = vrot.slane %v729_v32, 1  ;;  %v746_v53 = vrot.slane %v730_v37, 1  ;;  %v748_v54 = vrot.slane %v732_v41, 1  ;;  %v966_v32 = vld [vmem:[#allocation7 + $0x128] sm:$0xff] }
 0x288   :  { %2349 = vmatpush3.bf16.msra.mxu0 %v2346_v57  ;;  %1977 = vmatprep.mubr.f32.mxu0 %v731_v38  ;;  %v740_v56 = vsel %vm172_vm1, %v736_v48, %v733_v52  ;;  %v739_v59 = vsel %vm172_vm1, %v733_v52, %v734_v51  ;;  %v2386_v37 = vpack.c.bf16 %v966_v32, %v965_v31  ;;  %v967_v38 = vld [vmem:[#allocation7 + $0x130] sm:$0xff]  ;;  %v1243_v32 = vld [vmem:[#allocation8 + $0x20] sm:$0xff] }
 0x289   :  { %2351 = vmatprep.subr.bf16.mxu0 %v2350_v42  ;;  %v738_v60 = vsel %vm172_vm1, %v734_v51, %v735_v49  ;;  %v737_v61 = vsel %vm172_vm1, %v735_v49, %v736_v48  ;;  %v751_v62 = vsel %vm189_vm4, %v745_v50, %v746_v53  ;;  %v3053_v57 = vsel %vm189_vm4, %v746_v53, %v747_v45  ;;  %v971_v52 = vld [vmem:[#allocation7 + $0x150] sm:$0xff]  ;;  %v972_v48 = vld [vmem:[#allocation7 + $0x158] sm:$0xff]  ;;  %v973_v51 = vld [vmem:[#allocation7 + $0x160] sm:$0xff] }
 0x28a   :  { %v3057_v2 = vsel %vm189_vm4, %v747_v45, %v748_v54  ;;  %v3061_v3 = vsel %vm189_vm4, %v748_v54, %v745_v50  ;;  %v2394_v45 = vpack.c.bf16 %v970_v46, %v969_v47  ;;  %v2398_v55 = vpack.c.bf16 %v972_v48, %v971_v52  ;;  %v974_v49 = vld [vmem:[#allocation7 + $0x168] sm:$0xff]  ;;  %v975_v53 = vld [vmem:[#allocation7 + $0x170] sm:$0xff]  ;;  %v976_v54 = vld [vmem:[#allocation7 + $0x178] sm:$0xff] }
 0x28b   :  { %1978 = vmatmul.mubr.f32.gmra.mrb[6].mxu0 %v732_v41  ;;  %v968_v41 = vld [vmem:[#allocation7 + $0x138] sm:$0xff]  ;;  %v2402_v50 = vpack.c.bf16 %v974_v49, %v973_v51  ;;  %v2462_v31 = vpack.c.bf16 %v1242_v28, %v1241_v25  ;;  %v1236_v48 = vld [vmem:[%s3198_s8] sm:$0x1] }
 0x28c   :  { %2353 = vmatpush3.bf16.msra.mxu0 %v2350_v42  ;;  %2012 = vmatprep.mubr.msk.f32.mxu0 %vm2881_vm2, %v740_v56  ;;  %v2390_v42 = vpack.c.bf16 %v968_v41, %v967_v38  ;;  %v2406_v56 = vpack.c.bf16 %v976_v54, %v975_v53  ;;  %v1245_v41 = vld [vmem:[#allocation8 + $0x30] sm:$0xff] }
 0x28d   :  { %2355 = vmatprep.subr.bf16.mxu0 %v2354_v58 }
 0x290   :  { %2357 = vmatpush3.bf16.msra.mxu0 %v2354_v58 }
 0x291   :  { %2359 = vmatprep.subr.bf16.mxu0 %v2358_v4 }
 0x294   :  { %2361 = vmatpush3.bf16.msra.mxu0 %v2358_v4 }
 0x295   :  { %2363 = vmatprep.subr.bf16.mxu0 %v2362_v8 }
 0x298   :  { %2365 = vmatpush3.bf16.msra.mxu0 %v2362_v8 }
 0x299   :  { %2367 = vmatprep.subr.bf16.mxu0 %v2366_v12 }
 0x29c   :  { %2369 = vmatpush3.bf16.msra.mxu0 %v2366_v12 }
 0x29d   :  { %2371 = vmatprep.subr.bf16.mxu0 %v2370_v15 }
 0x2a0   :  { %2373 = vmatpush3.bf16.msra.mxu0 %v2370_v15 }
 0x2a1   :  { %2375 = vmatprep.subr.bf16.mxu0 %v2374_v17 }
 0x2a4   :  { %2377 = vmatpush3.bf16.msra.mxu0 %v2374_v17  ;;  %v1239_v17 = vld [vmem:[#allocation8] sm:$0xff] }
 0x2a5   :  { %2379 = vmatprep.subr.bf16.mxu0 %v2378_v24 }
 0x2a7   :  { %2013 = vmatmul.mubr.f32.vlgmr.msra.gmra.mrb[4].mxu0 %v739_v59 }
 0x2a8   :  { %2015 = vmatprep.mubr.msk.f32.mxu0 %vm2902_vm3, %v738_v60  ;;  %2381 = vmatpush3.bf16.msra.mxu0 %v2378_v24  ;;  %v2458_v24 = vpack.c.bf16 %v1240_v20, %v1239_v17 }
 0x2a9   :  { %2383 = vmatprep.subr.bf16.mxu0 %v2382_v29 }
 0x2ab   :  { %2016 = vmatmul.mubr.f32.gmra.mrb[6].mxu0 %v737_v61 }
 0x2ac   :  { %2385 = vmatpush3.bf16.msra.mxu0 %v2382_v29  ;;  %2050 = vmatprep.mubr.f32.mxu0 %v751_v62 }
 0x2ad   :  { %2387 = vmatprep.subr.bf16.mxu0 %v2386_v37 }
 0x2b0   :  { %2389 = vmatpush3.bf16.msra.mxu0 %v2386_v37  ;;  %v1244_v37 = vld [vmem:[#allocation8 + $0x28] sm:$0xff] }
 0x2b1   :  { %2391 = vmatprep.subr.bf16.mxu0 %v2390_v42  ;;  %v2466_v38 = vpack.c.bf16 %v1244_v37, %v1243_v32 }
 0x2b4   :  { %2393 = vmatpush3.bf16.msra.mxu0 %v2390_v42  ;;  %v1246_v42 = vld [vmem:[#allocation8 + $0x38] sm:$0xff] }
 0x2b5   :  { %2395 = vmatprep.subr.bf16.mxu0 %v2394_v45  ;;  %v2470_v47 = vpack.c.bf16 %v1246_v42, %v1245_v41  ;;  %v1498_v41 = vld [vmem:[%s3199_s9] sm:$0x1]  ;;  %s2705_s9 = smov [#allocation11]  }
 0x2b6   :  { %s1562_s0 = sshll.u32 %s2705_s9, 4  ;;  %s1563_s0 = int_to_ptr.vmem [resolvable:$true] %s1562_s0 }
 0x2b7   :  { %p2670_p13 = scmp.lt.s32.totalorder %s1563_s0, %s1563_s0 }
 0x2b8   :  { %2397 = vmatpush3.bf16.msra.mxu0 %v2394_v45 }
 0x2b9   :  { %2399 = vmatprep.subr.bf16.mxu0 %v2398_v55 }
 0x2bc   :  { %2401 = vmatpush3.bf16.msra.mxu0 %v2398_v55 }
 0x2bd   :  { %2403 = vmatprep.subr.bf16.mxu0 %v2402_v50 }
 0x2c0   :  { %2405 = vmatpush3.bf16.msra.mxu0 %v2402_v50 }
 0x2c1   :  { %2407 = vmatprep.subr.bf16.mxu0 %v2406_v56 }
 0x2c4   :  { %2409 = vmatpush3.bf16.msra.mxu0 %v2406_v56 }
 0x2c5   :  { %2474 = vmatprep.subr.bf16.mxu0 %v2702_v0 }
 0x2c7   :  { %2051 = vmatmul.mubr.msk.f32.vlgmr.msra.gmra.mrb[4].mxu0 %vm2927_vm5, %v3053_v57 }
 0x2c8   :  { %2053 = vmatprep.mubr.f32.mxu0 %v3057_v2  ;;  %2476 = vmatpush3.bf16.msra.mxu0 %v2864_v23 }
 0x2c9   :  { %2477 = vmatprep.subr.bf16.mxu0 %v2702_v0 }
 0x2cb   :  { %2054 = vmatmul.mubr.msk.f32.gmra.mrb[6].mxu0 %vm2937_vm6, %v3061_v3 }
 0x2cc   :  { %2479 = vmatpush3.bf16.msra.mxu0 %v2867_v26  ;;  %2180 = vmatprep.mubr.msk.f32.mxu0 %vm2703_vm7, %v2704_v44 }
 0x2cd   :  { %2480 = vmatprep.subr.bf16.mxu0 %v2702_v0 }
 0x2d0   :  { %2482 = vmatpush3.bf16.msra.mxu0 %v2879_v36 }
 0x2d1   :  { %2483 = vmatprep.subr.bf16.mxu0 %v2702_v0 }
 0x2d4   :  { %2485 = vmatpush3.bf16.msra.mxu0 %v2948_v27 }
 0x2d5   :  { %2486 = vmatprep.subr.bf16.mxu0 %v2702_v0 }
 0x2d8   :  { %2488 = vmatpush3.bf16.msra.mxu0 %v2952_v30 }
 0x2d9   :  { %2489 = vmatprep.subr.bf16.mxu0 %v2702_v0 }
 0x2dc   :  { %2491 = vmatpush3.bf16.msra.mxu0 %v2956_v34 }
 0x2dd   :  { %2492 = vmatprep.subr.bf16.mxu0 %v2702_v0 }
 0x2e0   :  { %2494 = vmatpush3.bf16.msra.mxu0 %v2960_v40 }
 0x2e1   :  { %2495 = vmatprep.subr.bf16.mxu0 %v2702_v0 }
 0x2e4   :  { %2497 = vmatpush3.bf16.msra.mxu0 %v2964_v43 }
 0x39a   :  { %v3092_v13 = vpop.f32.mrb[4].mxu0 }
 0x39b   :  { %v1076_v18 = vmul.f32 %v3092_v13, %v3092_v13  ;;  %v3096_v58 = vpop.f32.mrb[5].mxu0 }
 0x39c   :  { %v1066_v59 = vadd.f32 %v3092_v13, %v3096_v58  ;;  %v1075_v60 = vmul.f32 %v3096_v58, %v3096_v58 }
 0x39e   :  { %v1079_v61 = vadd.f32 %v1076_v18, %v1075_v60  ;;  %v3102_v62 = vpop.f32.mrb[6].mxu0 }
 0x39f   :  { %v3104_v57 = vpop.f32.mrb[7].mxu0  ;;  %v1078_v2 = vmul.f32 %v3102_v62, %v3102_v62 }
 0x3a0   :  { %v1067_v63 = vadd.f32 %v1066_v59, %v3104_v57  ;;  %v1077_v1 = vmul.f32 %v3104_v57, %v3104_v57 }
 0x3a2   :  { %v1068_v3 = vadd.f32 %v3102_v62, %v1067_v63  ;;  %v1080_v4 = vadd.f32 %v1079_v61, %v1077_v1 }
 0x3a4   :  { %v1069_v6 = vrot.slane %v1068_v3, 4  ;;  %v1081_v7 = vadd.f32 %v1080_v4, %v1078_v2 }
 0x3a6   :  { %v1070_v8 = vadd.f32 %v1069_v6, %v1068_v3  ;;  %v1082_v14 = vrot.slane %v1081_v7, 4 }
 0x3a8   :  { %v1071_v10 = vrot.slane %v1070_v8, 2  ;;  %v1083_v15 = vadd.f32 %v1082_v14, %v1081_v7 }
 0x3aa   :  { %v1072_v11 = vadd.f32 %v1071_v10, %v1070_v8  ;;  %v1084_v16 = vrot.slane %v1083_v15, 2 }
 0x3ac   :  { %v1073_v12 = vrot.slane %v1072_v11, 1  ;;  %v1085_v39 = vadd.f32 %v1084_v16, %v1083_v15 }
 0x3ae   :  { %v1074_v19 = vadd.f32 %v1073_v12, %v1072_v11  ;;  %v1086_v21 = vrot.slane %v1085_v39, 1 }
 0x3b0   :  { %2089 = vmatmul.mubr.f32.vlgmr.msra.gmra.mrb[4].mxu1 %v1074_v19  ;;  %v1087_v29 = vadd.f32 %v1086_v21, %v1085_v39 }
 0x3b1   :  { %2436 = vmatpush3.bf16.msra.mxu1 %v2864_v23  ;;  %2123 = vmatprep.mubr.msk.f32.mxu1 %vm2703_vm7, %v2704_v44 }
 0x3b2   :  { %2437 = vmatprep.subr.bf16.mxu1 %v2702_v0 }
 0x3b5   :  { %2439 = vmatpush3.bf16.msra.mxu1 %v2867_v26 }
 0x3b6   :  { %2440 = vmatprep.subr.bf16.mxu1 %v2702_v0 }
 0x3b9   :  { %2442 = vmatpush3.bf16.msra.mxu1 %v2879_v36 }
 0x3ba   :  { %2443 = vmatprep.subr.bf16.mxu1 %v2702_v0 }
 0x3bd   :  { %2445 = vmatpush3.bf16.msra.mxu1 %v2948_v27 }
 0x3be   :  { %2446 = vmatprep.subr.bf16.mxu1 %v2702_v0 }
 0x3c1   :  { %2448 = vmatpush3.bf16.msra.mxu1 %v2952_v30 }
 0x3c2   :  { %2449 = vmatprep.subr.bf16.mxu1 %v2702_v0 }
 0x3c5   :  { %2451 = vmatpush3.bf16.msra.mxu1 %v2956_v34 }
 0x3c6   :  { %2452 = vmatprep.subr.bf16.mxu1 %v2702_v0 }
 0x3c9   :  { %2454 = vmatpush3.bf16.msra.mxu1 %v2960_v40 }
 0x3ca   :  { %2455 = vmatprep.subr.bf16.mxu1 %v2702_v0 }
 0x3cd   :  { %2457 = vmatpush3.bf16.msra.mxu1 %v2964_v43 }
 0x3ce   :  { %2459 = vmatprep.subr.bf16.mxu1 %v2458_v24 }
 0x3d0   :  { %2124 = vmatmul.mubr.f32.vlgmr.msra.gmra.mrb[6].mxu1 %v1087_v29 }
 0x3d1   :  { %2461 = vmatpush3.bf16.msra.mxu1 %v2458_v24  ;;  %2142 = vmatprep.mubr.msk.f32.mxu1 %vm215_vm0, %v2856_v9 }
 0x3d2   :  { %2463 = vmatprep.subr.bf16.mxu1 %v2462_v31 }
 0x3d5   :  { %2465 = vmatpush3.bf16.msra.mxu1 %v2462_v31 }
 0x3d6   :  { %2467 = vmatprep.subr.bf16.mxu1 %v2466_v38 }
 0x3d9   :  { %2469 = vmatpush3.bf16.msra.mxu1 %v2466_v38 }
 0x3da   :  { %2471 = vmatprep.subr.bf16.mxu1 %v2470_v47 }
 0x3dd   :  { %2473 = vmatpush3.bf16.msra.mxu1 %v2470_v47 }
 0x3de   :  { %2498 = vmatprep.subr.bf16.mxu1 %v2702_v0 }
 0x3e0   :  { %2143 = vmatmul.mubr.msk.f32.vlgmr.msra.gmra.mrb[8].mxu1 %vm215_vm0, %v2874_v33 }
 0x3e1   :  { %2145 = vmatprep.mubr.msk.f32.mxu1 %vm215_vm0, %v2876_v35  ;;  %2500 = vmatpush3.bf16.msra.mxu1 %v2864_v23 }
 0x3e2   :  { %2501 = vmatprep.subr.bf16.mxu1 %v2702_v0 }
 0x3e4   :  { %2146 = vmatmul.mubr.msk.f32.gmra.mrb[10].mxu1 %vm215_vm0, %v2862_v22 }
 0x3e5   :  { %2503 = vmatpush3.bf16.msra.mxu1 %v2867_v26  ;;  %2215 = vmatprep.mubr.msk.f32.mxu1 %vm2703_vm7, %v2704_v44 }
 0x3e6   :  { %2504 = vmatprep.subr.bf16.mxu1 %v2702_v0 }
 0x3e9   :  { %2506 = vmatpush3.bf16.msra.mxu1 %v2879_v36 }
 0x3ea   :  { %2507 = vmatprep.subr.bf16.mxu1 %v2702_v0 }
 0x3ed   :  { %2509 = vmatpush3.bf16.msra.mxu1 %v2948_v27 }
 0x3ee   :  { %2510 = vmatprep.subr.bf16.mxu1 %v2702_v0 }
 0x3f1   :  { %2512 = vmatpush3.bf16.msra.mxu1 %v2952_v30 }
 0x3f2   :  { %2513 = vmatprep.subr.bf16.mxu1 %v2702_v0 }
 0x3f5   :  { %2515 = vmatpush3.bf16.msra.mxu1 %v2956_v34  ;;  %v1232_v34 = vld [vmem:[%s3197_s7] sm:$0x1] }
 0x3f6   :  { %2516 = vmatprep.subr.bf16.mxu1 %v2702_v0 }
 0x3f9   :  { %2518 = vmatpush3.bf16.msra.mxu1 %v2960_v40 }
 0x3fa   :  { %2519 = vmatprep.subr.bf16.mxu1 %v2702_v0 }
 0x3fd   :  { %2521 = vmatpush3.bf16.msra.mxu1 %v2964_v43 }
 0x483   :  { %v1154_v9 = vpop.f32.mrb[4].mxu1 }
 0x484   :  { %v2090_v22 = vpop.f32.mrb[5].mxu1  ;;  %v1158_v23 = vmul.f32 0.001953125, %v1154_v9  ;;  %v1502_v9 = vld [vmem:[%s3200_s10] sm:$0x1]  ;;  %s2665_s10 = scalar_lea.vmem %s1563_s0, 512 }
 0x485   :  { %p2666_p12 = scmp.ne.s32.totalorder %s1563_s0, %s2665_s10  ;;  %p2671_p0 = scmp.lt.s32.totalorder %s2665_s10, %s2665_s10 }
 0x486   :  { %v1230_v33 = vmul.f32 %v1158_v23, %v1158_v23 }
 0x487   :  { %p2672_p1 = por %p2671_p0, %p2670_p13 }
 0x489   :  { %p2673_p2 = pnand %p2672_p1, %p2666_p12 }
 0x4a3   :  { %v1225_v26 = vpop.f32.mrb[6].mxu1 }
 0x4a4   :  { %v1229_v35 = vmul.f32 0.001953125, %v1225_v26  ;;  %v2125_v36 = vpop.f32.mrb[7].mxu1 }
 0x4a6   :  { %v1231_v27 = vsub.f32 %v1229_v35, %v1230_v33 }
 0x4a8   :  { %v1233_v30 = vadd.f32 1e-05, %v1231_v27 }
 0x4aa   :  { %2551 = vrsqrt.f32 %v1233_v30 }
 0x4b3   :  { %v2144_v44 = vpop.f32.mrb[8].mxu1 }
 0x4b4   :  { %v2552_v40 = vpop.eup %2551  ;;  %v1342_v46 = vmul.f32 %v2144_v44, %v2144_v44  ;;  %v1313_v0 = vpop.f32.mrb[9].mxu1 }
 0x4b5   :  { %v1235_v45 = vmul.f32 %v2552_v40, %v1232_v34  ;;  %v1332_v43 = vadd.f32 %v2144_v44, %v1313_v0  ;;  %v1341_v52 = vmul.f32 %v1313_v0, %v1313_v0 }
 0x4b7   :  { %v1237_v55 = vmul.f32 %v1235_v45, %v1158_v23  ;;  %v1509_v51 = vrot.slane %v1235_v45, %v3030_v5  ;;  %v1345_v49 = vadd.f32 %v1342_v46, %v1341_v52  ;;  %v2147_v50 = vpop.f32.mrb[10].mxu1 }
 0x4b8   :  { %v1323_v53 = vpop.f32.mrb[11].mxu1  ;;  %v1344_v2 = vmul.f32 %v2147_v50, %v2147_v50 }
 0x4b9   :  { %v1238_v54 = vsub.f32 %v1236_v48, %v1237_v55  ;;  %v1333_v56 = vadd.f32 %v1332_v43, %v1323_v53  ;;  %v1343_v18 = vmul.f32 %v1323_v53, %v1323_v53  ;;  %v1511_v59 = vmul.f32 %v1509_v51, %v3096_v58 }
 0x4ba   :  { %v1512_v60 = vmul.f32 %v3092_v13, %v1509_v51  ;;  %v1513_v61 = vmul.f32 %v1509_v51, %v3104_v57  ;;  %v1514_v63 = vmul.f32 %v3102_v62, %v1509_v51 }
 0x4bb   :  { %v1519_v1 = vrot.slane %v1238_v54, %v3030_v5  ;;  %v1334_v3 = vadd.f32 %v2147_v50, %v1333_v56  ;;  %v1346_v4 = vadd.f32 %v1345_v49, %v1343_v18 }
 0x4bd   :  { %v1335_v6 = vrot.slane %v1334_v3, 4  ;;  %v1347_v7 = vadd.f32 %v1346_v4, %v1344_v2  ;;  %v1521_v8 = vadd.f32 %v1519_v1, %v1511_v59  ;;  %v1522_v10 = vadd.f32 %v1519_v1, %v1512_v60 }
 0x4be   :  { %v1523_v11 = vadd.f32 %v1519_v1, %v1513_v61  ;;  %v1524_v12 = vadd.f32 %v1519_v1, %v1514_v63 }
 0x4bf   :  { %v1336_v19 = vadd.f32 %v1335_v6, %v1334_v3  ;;  %v1348_v14 = vrot.slane %v1347_v7, 4 }
 0x4c1   :  { %v1337_v58 = vrot.slane %v1336_v19, 2  ;;  %v1349_v15 = vadd.f32 %v1348_v14, %v1347_v7 }
 0x4c3   :  { %v1338_v13 = vadd.f32 %v1337_v58, %v1336_v19  ;;  %v1350_v16 = vrot.slane %v1349_v15, 2 }
 0x4c5   :  { %v1339_v57 = vrot.slane %v1338_v13, 1  ;;  %v1351_v39 = vadd.f32 %v1350_v16, %v1349_v15 }
 0x4c7   :  { %v1340_v62 = vadd.f32 %v1339_v57, %v1338_v13  ;;  %v1352_v17 = vrot.slane %v1351_v39, 1 }
 0x4c9   :  { %2181 = vmatmul.mubr.f32.vlgmr.msra.gmra.mrb[8].mxu0 %v1340_v62  ;;  %v1353_v20 = vadd.f32 %v1352_v17, %v1351_v39 }
 0x4cb   :  { %2216 = vmatmul.mubr.f32.vlgmr.msra.gmra.mrb[12].mxu1 %v1353_v20 }
 0x59c   :  { %v1420_v21 = vpop.f32.mrb[8].mxu0 }
 0x59d   :  { %v1424_v24 = vmul.f32 0.001953125, %v1420_v21  ;;  %v2182_v25 = vpop.f32.mrb[9].mxu0 }
 0x59e   :  { %v1491_v28 = vpop.f32.mrb[12].mxu1 }
 0x59f   :  { %v1496_v29 = vmul.f32 %v1424_v24, %v1424_v24  ;;  %v1495_v31 = vmul.f32 0.001953125, %v1491_v28  ;;  %v2217_v32 = vpop.f32.mrb[13].mxu1 }
 0x5a1   :  { %v1497_v37 = vsub.f32 %v1495_v31, %v1496_v29 }
 0x5a3   :  { %v1499_v38 = vadd.f32 1e-05, %v1497_v37 }
 0x5a5   :  { %2553 = vrsqrt.f32 %v1499_v38 }
 0x5af   :  { %v2554_v42 = vpop.eup %2553 }
 0x5b0   :  { %v1501_v47 = vmul.f32 %v2554_v42, %v1498_v41 }
 0x5b2   :  { %v1503_v22 = vmul.f32 %v1501_v47, %v1424_v24  ;;  %v1529_v23 = vrot.slane %v1501_v47, %v3030_v5 }
 0x5b4   :  { %v1504_v26 = vsub.f32 %v1502_v9, %v1503_v22  ;;  %v1531_v33 = vmul.f32 %v1529_v23, %v1313_v0  ;;  %v1532_v35 = vmul.f32 %v2144_v44, %v1529_v23  ;;  %v1533_v36 = vmul.f32 %v1529_v23, %v1323_v53 }
 0x5b5   :  { %v1534_v27 = vmul.f32 %v2147_v50, %v1529_v23 }
 0x5b6   :  { %v1539_v30 = vrot.slane %v1504_v26, %v3030_v5 }
 0x5b8   :  { %v1541_v34 = vadd.f32 %v1539_v30, %v1531_v33  ;;  %v1542_v40 = vadd.f32 %v1539_v30, %v1532_v35  ;;  %v1543_v46 = vadd.f32 %v1539_v30, %v1533_v36  ;;  %v1544_v45 = vadd.f32 %v1539_v30, %v1534_v27 }
 0x5ba   :  { %v1545_v43 = vadd.f32 %v1541_v34, %v1521_v8  ;;  %v1546_v52 = vadd.f32 %v1542_v40, %v1522_v10  ;;  %v1547_v48 = vadd.f32 %v1543_v46, %v1523_v11  ;;  %v1548_v55 = vadd.f32 %v1544_v45, %v1524_v12 }
 0x5bc   :  { %v1549_v51 = vmax.f32 %v1545_v43, 0.0  ;;  %v1550_v49 = vmax.f32 %v1546_v52, 0.0  ;;  %v1551_v54 = vmax.f32 %v1547_v48, 0.0  ;;  %v1552_v56 = vmax.f32 %v1548_v55, 0.0 }
 0x5be   :  { %1553 = vst [vmem:[#allocation11] sm:$0xff] %v1549_v51  ;;  %1554 = vst [vmem:[#allocation11 + $0x8] sm:$0xff] %v1550_v49 }
 0x5bf   :  { %1555 = vst [vmem:[#allocation11 + $0x10] sm:$0xff] %v1551_v54  ;;  %1556 = vst [vmem:[#allocation11 + $0x18] sm:$0xff] %v1552_v56 }
 0x5c0   :  { %2676 = shalt.err (!%p2673_p2)
}
 0x5c1   :  { %s2677_s13 = scalar_lea.hbm %s3201_s11, 512 }
 0x5c2   :  { %p2678_p3 = scmp.ne.s32.totalorder %s3201_s11, %s2677_s13  ;;  %p2681_p4 = scmp.lt.u32.totalorder %s2677_s13, %s3201_s11 }
 0x5c4   :  { %p2683_p5 = pnand %p2681_p4, %p2678_p3 }
 0x5c6   :  { %2686 = shalt.err (!%p2683_p5)
}
 0x5c7   :  { %1568 = dma.vmem_to_hbm [thread:$0]  %s1563_s0, 512, %s3201_s11, [#allocation4], %s2697_s29, %s2697_s29, %s2698_s30  }
 0x5c8   :  { %2693 = dma.done.wait [#allocation4], 512  }
 0x5c9   :  { %2694 = vsyncadd [#allocation4], 4294966784 }
 0x5ca   :  { %1572 = vsyncpa [#allocation3], 1 }
 0x5cb   :  { %1573 = vsyncpa [#allocation6], 1 }
 0x5cc   :  { %1574 = vsyncpa [#allocation9], 1 }
 0x5cd   :  { %1575 = vsyncpa [#allocation4], 1 }

</bundles_post_ra>
